<compile_context>
chip_gen: v5e
topology: v5e:2x2
jax: 0.10.0
libtpu: 0.0.40
codegen_flags: <defaults>
</compile_context>

<pallas_src>
import functools

import jax
import jax.numpy as jnp
from jax.experimental import pallas as pl
from jax.experimental.pallas import tpu as pltpu

_SQRT2_INV = 0.7071067811865476
_CIN_PAD = 8          # stem input channels padded to one f32 sublane granule
_K = 3                # Conv1d kernel_size, padding = 1 ('same')


def _gelu(x):
    # exact (erf) GELU — matches torch.nn.GELU() default
    return 0.5 * x * (1.0 + jax.lax.erf(x * _SQRT2_INV))


# ----------------- fused branch kernel (stem + n residual blocks, one lane tile) -----------------

def _imu_kernel(mask_ref, x_ref, sw_ref, bw_ref, sh_ref, o_ref, *, n_blocks):
    x = x_ref[0, 0]                       # (_CIN_PAD, Lt)
    sw = sw_ref[0]                        # (half, K*_CIN_PAD)        BN scale folded in
    bw = bw_ref[0]                        # (2*n_blocks, half, K*half) BN scale folded in
    sh = sh_ref[0]                        # (n_convs, half, 1)
    half = sw.shape[0]
    lt = x.shape[1]
    # halo / tile-pad mask; broadcast hoisted once (JAX does not CSE broadcast_in_dim)
    mask = jnp.broadcast_to(mask_ref[...], (half, lt))

    def conv(xa, w, idx):
        # 'same' Conv1d(K=3) as ONE MXU matmul: the 3 shifted tap copies of the
        # activation are stacked along the contraction (sublane) axis.  The lane
        # shifts use pltpu.roll (XLU slot -> nearly free); wraparound is exact
        # because every conv input has zero halo / pad columns.
        x_m1 = pltpu.roll(xa, shift=1, axis=1)         # col i <- xa[:, i-1]  (tap k=0)
        x_p1 = pltpu.roll(xa, shift=lt - 1, axis=1)    # col i <- xa[:, i+1]  (tap k=2)
        xs = jnp.concatenate([x_m1, xa, x_p1], axis=0)
        y = jnp.dot(w, xs, preferred_element_type=jnp.float32)
        return y + sh[idx]                # conv bias + eval-mode BatchNorm shift

    # stem: Conv1d + BN + GELU (+ Dropout = identity in eval)
    y = mask * _gelu(conv(x, sw, 0))
    # residual blocks: y <- gelu(bn2(conv2(gelu(bn1(conv1(y)))))) + y
    for i in range(n_blocks):
        h = mask * _gelu(conv(y, bw[2 * i], 1 + 2 * i))
        y = _gelu(conv(h, bw[2 * i + 1], 2 + 2 * i)) + y
        if i != n_blocks - 1:             # last block's halos are stripped outside the kernel
            y = mask * y
    o_ref[0, 0] = y                       # (half, Lt) padded layout; halos stripped outside


# ----------------------- parameter packing (host side, done once) -----------------------

def _stack_taps(w, scale, cin_pad):
    # (Cout, Cin, K), (Cout,) -> (Cout, K*cin_pad), tap-major blocks [k=0 | k=1 | k=2]
    # with the eval-mode BatchNorm scale folded into the weights.
    cout, cin, k = w.shape
    wp = jnp.pad(w, ((0, 0), (0, cin_pad - cin), (0, 0))) * scale[:, None, None]
    return jnp.concatenate([wp[:, :, i] for i in range(k)], axis=1)


def pack_imu_params(p):
    """Stack the two branches' (stem + block) conv weights for the fused call."""
    stem_w, blk_w, shift = [], [], []
    for br in ('xyz', 'smv'):
        bp = p[br]
        half = bp['stem']['w'].shape[0]
        convs = [bp['stem']]
        for blk in bp['blocks']:
            convs += [blk['c1'], blk['c2']]
        stem_w.append(_stack_taps(bp['stem']['w'], bp['stem']['scale'], _CIN_PAD))
        blk_w.append(jnp.stack([_stack_taps(c['w'], c['scale'], half) for c in convs[1:]]))
        shift.append(jnp.stack([c['shift'] for c in convs]).reshape(len(convs), half, 1))
    return {
        'stem_w': jnp.stack(stem_w),     # (2, half, K*_CIN_PAD)
        'blk_w': jnp.stack(blk_w),       # (2, 2*n_blocks, half, K*half)
        'shift': jnp.stack(shift),       # (2, 2*n_blocks+1, half, 1)
    }


# ----------------------- IMUProcessor forward -----------------------

def imu_processor(x, packed, *, lanes_per_step=1024):
    """x: (B, T, acc_coords) -> (B, embed_dim//2, 2*T)."""
    B, T, _ = x.shape
    # TODO(synk): the reference forward slices the time dim (x[:, :-1] / x[:, -1:]),
    # which is inconsistent with Conv1d(acc_coords-1, ...); implemented as the
    # intended channel split (xyz channels vs. the SMV channel).
    xyz = jnp.transpose(x[..., :-1], (0, 2, 1))   # (B, acc_coords-1, T)
    smv = jnp.transpose(x[..., -1:], (0, 2, 1))   # (B, 1, T)

    Tp = T + 2                                     # per-sample width incl. 2 halo cols
    bb = max(1, min(B, lanes_per_step // Tp))      # samples folded into each lane tile
    n_tiles = -(-B // bb)
    Bp = n_tiles * bb
    Lt = -(-(bb * Tp) // 128) * 128                # lane-dense tile width (mult of 128)

    half = packed['stem_w'].shape[1]
    n_blocks = packed['blk_w'].shape[1] // 2
    n_convs = 2 * n_blocks + 1
    kkc = packed['stem_w'].shape[2]                # K * _CIN_PAD

    def prep(xb):
        # (B, C, T) -> (n_tiles, _CIN_PAD, Lt): pad channels to a sublane granule,
        # add one zero halo column each side of every sample, fold bb samples per
        # tile into the lane axis and zero-pad each tile to a multiple of 128.
        c = xb.shape[1]
        xp = jnp.pad(xb, ((0, Bp - B), (0, _CIN_PAD - c), (1, 1)))     # (Bp, 8, Tp)
        xp = xp.reshape(n_tiles, bb, _CIN_PAD, Tp)
        xp = jnp.transpose(xp, (0, 2, 1, 3)).reshape(n_tiles, _CIN_PAD, bb * Tp)
        return jnp.pad(xp, ((0, 0), (0, 0), (0, Lt - bb * Tp)))

    x_stk = jnp.stack([prep(xyz), prep(smv)])      # (2, n_tiles, _CIN_PAD, Lt)

    # per-tile halo / pad mask (identical for every tile; constant block -> loaded once)
    pos = jnp.arange(Lt, dtype=jnp.int32)
    r = pos % Tp
    mask = ((r != 0) & (r != Tp - 1) & (pos < bb * Tp)).astype(jnp.float32).reshape(1, Lt)

    kern = functools.partial(_imu_kernel, n_blocks=n_blocks)
    out = pl.pallas_call(
        kern,
        out_shape=jax.ShapeDtypeStruct((2, n_tiles, half, Lt), jnp.float32),
        grid=(2, n_tiles),                         # (branch, lane tile); tile axis innermost
        in_specs=[
            pl.BlockSpec((1, Lt), lambda b, t: (0, 0)),
            pl.BlockSpec((1, 1, _CIN_PAD, Lt), lambda b, t: (b, t, 0, 0)),
            # weights / shifts: index_maps ignore the tile index -> stay VMEM-resident
            pl.BlockSpec((1, half, kkc), lambda b, t: (b, 0, 0)),
            pl.BlockSpec((1, 2 * n_blocks, half, _K * half), lambda b, t: (b, 0, 0, 0)),
            pl.BlockSpec((1, n_convs, half, 1), lambda b, t: (b, 0, 0, 0)),
        ],
        out_specs=pl.BlockSpec((1, 1, half, Lt), lambda b, t: (b, t, 0, 0)),
        compiler_params=pltpu.CompilerParams(
            dimension_semantics=("parallel", "arbitrary")),
    )(mask, x_stk, packed['stem_w'], packed['blk_w'], packed['shift'])

    # strip per-sample halos & tile padding, restore (B, half, T), concat branches on time
    out = out[..., :bb * Tp].reshape(2, n_tiles, half, bb, Tp)[..., 1:-1]   # (2,nt,half,bb,T)
    out = jnp.transpose(out, (0, 1, 3, 2, 4)).reshape(2, Bp, half, T)[:, :B]
    return jnp.concatenate([out[0], out[1]], axis=-1)                        # (B, half, 2T)


# ----------------------- pure-JAX reference (independent check path) -----------------------

def _ref_conv_bn_gelu(x, p):
    y = jax.lax.conv_general_dilated(
        x, p['w'], window_strides=(1,), padding=((1, 1),),
        dimension_numbers=('NCH', 'OIH', 'NCH'),
        precision=jax.lax.Precision.HIGHEST)
    y = y * p['scale'][None, :, None] + p['shift'][None, :, None]
    return jax.nn.gelu(y, approximate=False)


def ref_imu_processor(x, params):
    xyz = jnp.transpose(x[..., :-1], (0, 2, 1))
    smv = jnp.transpose(x[..., -1:], (0, 2, 1))

    def branch(xb, bp):
        y = _ref_conv_bn_gelu(xb, bp['stem'])
        for blk in bp['blocks']:
            h = _ref_conv_bn_gelu(y, blk['c1'])
            y = _ref_conv_bn_gelu(h, blk['c2']) + y
        return y

    return jnp.concatenate([branch(xyz, params['xyz']),
                            branch(smv, params['smv'])], axis=-1)


# ----------------------- deterministic parameter init -----------------------

def init_params(key, *, acc_coords, embed_dim, num_blocks=3):
    keys = iter(jax.random.split(key, 64))
    half = embed_dim // 2

    def nrm(shape, s=0.1):
        return (s * jax.random.normal(next(keys), shape)).astype(jnp.float32)

    def conv_bn(cin, cout, k=_K):
        w = nrm((cout, cin, k))
        bias = nrm((cout,))
        gamma = 1.0 + nrm((cout,))
        beta = nrm((cout,))
        # eval-mode BatchNorm with running_mean=0, running_var=1 folded in.
        # NOTE: for trained checkpoints fold the actual running stats here.
        scale = gamma / jnp.sqrt(1.0 + 1e-5)
        shift = bias * scale + beta
        return {'w': w, 'scale': scale, 'shift': shift}

    def resblock(c):
        return {'c1': conv_bn(c, c), 'c2': conv_bn(c, c)}

    def branch(cin):
        return {'stem': conv_bn(cin, half),
                'blocks': [resblock(half) for _ in range(num_blocks)]}

    return {'xyz': branch(acc_coords - 1), 'smv': branch(1)}


if __name__ == "__main__":
    B, T = 2, 16
    acc_coords = 4
    embed_dim = 32

    key = jax.random.PRNGKey(0)
    kx, kp = jax.random.split(key)
    x = jax.random.normal(kx, (B, T, acc_coords), jnp.float32)
    params = init_params(kp, acc_coords=acc_coords, embed_dim=embed_dim)
    packed = pack_imu_params(params)

    fwd = jax.jit(imu_processor)
    out = fwd(x, packed)
    jax.block_until_ready(out)
    assert out.shape == (B, embed_dim // 2, 2 * T), out.shape

    ref = ref_imu_processor(x, params)
    err = float(jnp.max(jnp.abs(out - ref)))
    assert jnp.allclose(out, ref, atol=1e-3, rtol=1e-3), err
    print("KERNEL_OK")
</pallas_src>

<mosaic_0001>
module attributes {stable_mosaic.version = 11 : i64} {
  func.func @_imu_kernel(%arg0: i32, %arg1: i32, %arg2: memref<1x128xf32, #tpu.memory_space<vmem>>, %arg3: memref<1x1x8x128xf32, #tpu.memory_space<vmem>>, %arg4: memref<1x16x24xf32, #tpu.memory_space<vmem>>, %arg5: memref<1x6x16x48xf32, #tpu.memory_space<vmem>>, %arg6: memref<1x7x16x1xf32, #tpu.memory_space<vmem>>, %arg7: memref<1x1x16x128xf32, #tpu.memory_space<vmem>>) attributes {dimension_semantics = [#tpu.dimension_semantics<parallel>, #tpu.dimension_semantics<arbitrary>], iteration_bounds = array<i64: 2, 1>, scalar_prefetch = 0 : i64, scratch_operands = 0 : i64, tpu.core_type = #tpu.core_type<tc>, window_params = [{pipeline_mode = #tpu.pipeline_mode<synchronous>, transform_indices = @transform_0, window_bounds = array<i64: 1, 128>}, {transform_indices = @transform_1, window_bounds = array<i64: 1, 1, 8, 128>}, {transform_indices = @transform_2, window_bounds = array<i64: 1, 16, 24>}, {transform_indices = @transform_3, window_bounds = array<i64: 1, 6, 16, 48>}, {transform_indices = @transform_4, window_bounds = array<i64: 1, 7, 16, 1>}, {transform_indices = @transform_5, window_bounds = array<i64: 1, 1, 16, 128>}]} {
    %c0 = arith.constant 0 : index
    %c0_0 = arith.constant 0 : index
    %c0_1 = arith.constant 0 : index
    %c0_2 = arith.constant 0 : index
    %0 = vector.load %arg3[%c0, %c0_0, %c0_1, %c0_2] : memref<1x1x8x128xf32, #tpu.memory_space<vmem>>, vector<1x1x8x128xf32>
    %1 = vector.shape_cast %0 : vector<1x1x8x128xf32> to vector<8x128xf32>
    %c0_3 = arith.constant 0 : index
    %c0_4 = arith.constant 0 : index
    %c0_5 = arith.constant 0 : index
    %2 = vector.load %arg4[%c0_3, %c0_4, %c0_5] : memref<1x16x24xf32, #tpu.memory_space<vmem>>, vector<1x16x24xf32>
    %3 = vector.shape_cast %2 : vector<1x16x24xf32> to vector<16x24xf32>
    %c0_6 = arith.constant 0 : index
    %c0_7 = arith.constant 0 : index
    %c0_8 = arith.constant 0 : index
    %c0_9 = arith.constant 0 : index
    %4 = vector.load %arg5[%c0_6, %c0_7, %c0_8, %c0_9] : memref<1x6x16x48xf32, #tpu.memory_space<vmem>>, vector<1x6x16x48xf32>
    %5 = vector.shape_cast %4 : vector<1x6x16x48xf32> to vector<6x16x48xf32>
    %c0_10 = arith.constant 0 : index
    %c0_11 = arith.constant 0 : index
    %c0_12 = arith.constant 0 : index
    %c0_13 = arith.constant 0 : index
    %6 = vector.load %arg6[%c0_10, %c0_11, %c0_12, %c0_13] : memref<1x7x16x1xf32, #tpu.memory_space<vmem>>, vector<1x7x16x1xf32>
    %7 = vector.shape_cast %6 : vector<1x7x16x1xf32> to vector<7x16x1xf32>
    %c0_14 = arith.constant 0 : index
    %c0_15 = arith.constant 0 : index
    %8 = vector.load %arg2[%c0_14, %c0_15] : memref<1x128xf32, #tpu.memory_space<vmem>>, vector<1x128xf32>
    %9 = vector.shape_cast %8 : vector<1x128xf32> to vector<1x128xf32>
    %10 = vector.broadcast %9 : vector<1x128xf32> to vector<16x128xf32>
    %c1_i32 = arith.constant 1 : i32
    %11 = tpu.dynamic_rotate %1 by %c1_i32 dim 1 : vector<8x128xf32>, i32 -> vector<8x128xf32>
    %c127_i32 = arith.constant 127 : i32
    %12 = tpu.dynamic_rotate %1 by %c127_i32 dim 1 : vector<8x128xf32>, i32 -> vector<8x128xf32>
    %13 = tpu.concatenate %11, %1, %12 in 0 : vector<8x128xf32>, vector<8x128xf32>, vector<8x128xf32> -> vector<24x128xf32>
    %cst = arith.constant dense<0.000000e+00> : vector<16x128xf32>
    %14 = tpu.matmul %3, %13, %cst {dimension_numbers = #tpu.dot_dimension_numbers<[1], [0], [0], [1], [0, 0, 1, 1], [], []>} : vector<16x24xf32>, vector<24x128xf32>, vector<16x128xf32> -> vector<16x128xf32>
    %15 = vector.extract_strided_slice %7 {offsets = [0, 0, 0], sizes = [1, 16, 1], strides = [1, 1, 1]} : vector<7x16x1xf32> to vector<1x16x1xf32>
    %16 = vector.shape_cast %15 : vector<1x16x1xf32> to vector<16x1xf32>
    %17 = vector.broadcast %16 : vector<16x1xf32> to vector<16x128xf32>
    %18 = arith.addf %14, %17 : vector<16x128xf32>
    %cst_16 = arith.constant 5.000000e-01 : f32
    %19 = vector.broadcast %cst_16 : f32 to vector<16x128xf32>
    %20 = arith.mulf %19, %18 : vector<16x128xf32>
    %cst_17 = arith.constant 0.707106769 : f32
    %21 = vector.broadcast %cst_17 : f32 to vector<16x128xf32>
    %22 = arith.mulf %18, %21 : vector<16x128xf32>
    %23 = math.erf %22 : vector<16x128xf32>
    %cst_18 = arith.constant 1.000000e+00 : f32
    %24 = vector.broadcast %cst_18 : f32 to vector<16x128xf32>
    %25 = arith.addf %24, %23 : vector<16x128xf32>
    %26 = arith.mulf %20, %25 : vector<16x128xf32>
    %27 = arith.mulf %10, %26 : vector<16x128xf32>
    %28 = vector.extract_strided_slice %5 {offsets = [0, 0, 0], sizes = [1, 16, 48], strides = [1, 1, 1]} : vector<6x16x48xf32> to vector<1x16x48xf32>
    %29 = vector.shape_cast %28 : vector<1x16x48xf32> to vector<16x48xf32>
    %c1_i32_19 = arith.constant 1 : i32
    %30 = tpu.dynamic_rotate %27 by %c1_i32_19 dim 1 : vector<16x128xf32>, i32 -> vector<16x128xf32>
    %c127_i32_20 = arith.constant 127 : i32
    %31 = tpu.dynamic_rotate %27 by %c127_i32_20 dim 1 : vector<16x128xf32>, i32 -> vector<16x128xf32>
    %32 = tpu.concatenate %30, %27, %31 in 0 : vector<16x128xf32>, vector<16x128xf32>, vector<16x128xf32> -> vector<48x128xf32>
    %cst_21 = arith.constant dense<0.000000e+00> : vector<16x128xf32>
    %33 = tpu.matmul %29, %32, %cst_21 {dimension_numbers = #tpu.dot_dimension_numbers<[1], [0], [0], [1], [0, 0, 1, 1], [], []>} : vector<16x48xf32>, vector<48x128xf32>, vector<16x128xf32> -> vector<16x128xf32>
    %34 = vector.extract_strided_slice %7 {offsets = [1, 0, 0], sizes = [1, 16, 1], strides = [1, 1, 1]} : vector<7x16x1xf32> to vector<1x16x1xf32>
    %35 = vector.shape_cast %34 : vector<1x16x1xf32> to vector<16x1xf32>
    %36 = vector.broadcast %35 : vector<16x1xf32> to vector<16x128xf32>
    %37 = arith.addf %33, %36 : vector<16x128xf32>
    %cst_22 = arith.constant 5.000000e-01 : f32
    %38 = vector.broadcast %cst_22 : f32 to vector<16x128xf32>
    %39 = arith.mulf %38, %37 : vector<16x128xf32>
    %cst_23 = arith.constant 0.707106769 : f32
    %40 = vector.broadcast %cst_23 : f32 to vector<16x128xf32>
    %41 = arith.mulf %37, %40 : vector<16x128xf32>
    %42 = math.erf %41 : vector<16x128xf32>
    %cst_24 = arith.constant 1.000000e+00 : f32
    %43 = vector.broadcast %cst_24 : f32 to vector<16x128xf32>
    %44 = arith.addf %43, %42 : vector<16x128xf32>
    %45 = arith.mulf %39, %44 : vector<16x128xf32>
    %46 = arith.mulf %10, %45 : vector<16x128xf32>
    %47 = vector.extract_strided_slice %5 {offsets = [1, 0, 0], sizes = [1, 16, 48], strides = [1, 1, 1]} : vector<6x16x48xf32> to vector<1x16x48xf32>
    %48 = vector.shape_cast %47 : vector<1x16x48xf32> to vector<16x48xf32>
    %c1_i32_25 = arith.constant 1 : i32
    %49 = tpu.dynamic_rotate %46 by %c1_i32_25 dim 1 : vector<16x128xf32>, i32 -> vector<16x128xf32>
    %c127_i32_26 = arith.constant 127 : i32
    %50 = tpu.dynamic_rotate %46 by %c127_i32_26 dim 1 : vector<16x128xf32>, i32 -> vector<16x128xf32>
    %51 = tpu.concatenate %49, %46, %50 in 0 : vector<16x128xf32>, vector<16x128xf32>, vector<16x128xf32> -> vector<48x128xf32>
    %cst_27 = arith.constant dense<0.000000e+00> : vector<16x128xf32>
    %52 = tpu.matmul %48, %51, %cst_27 {dimension_numbers = #tpu.dot_dimension_numbers<[1], [0], [0], [1], [0, 0, 1, 1], [], []>} : vector<16x48xf32>, vector<48x128xf32>, vector<16x128xf32> -> vector<16x128xf32>
    %53 = vector.extract_strided_slice %7 {offsets = [2, 0, 0], sizes = [1, 16, 1], strides = [1, 1, 1]} : vector<7x16x1xf32> to vector<1x16x1xf32>
    %54 = vector.shape_cast %53 : vector<1x16x1xf32> to vector<16x1xf32>
    %55 = vector.broadcast %54 : vector<16x1xf32> to vector<16x128xf32>
    %56 = arith.addf %52, %55 : vector<16x128xf32>
    %cst_28 = arith.constant 5.000000e-01 : f32
    %57 = vector.broadcast %cst_28 : f32 to vector<16x128xf32>
    %58 = arith.mulf %57, %56 : vector<16x128xf32>
    %cst_29 = arith.constant 0.707106769 : f32
    %59 = vector.broadcast %cst_29 : f32 to vector<16x128xf32>
    %60 = arith.mulf %56, %59 : vector<16x128xf32>
    %61 = math.erf %60 : vector<16x128xf32>
    %cst_30 = arith.constant 1.000000e+00 : f32
    %62 = vector.broadcast %cst_30 : f32 to vector<16x128xf32>
    %63 = arith.addf %62, %61 : vector<16x128xf32>
    %64 = arith.mulf %58, %63 : vector<16x128xf32>
    %65 = arith.addf %64, %27 : vector<16x128xf32>
    %66 = arith.mulf %10, %65 : vector<16x128xf32>
    %67 = vector.extract_strided_slice %5 {offsets = [2, 0, 0], sizes = [1, 16, 48], strides = [1, 1, 1]} : vector<6x16x48xf32> to vector<1x16x48xf32>
    %68 = vector.shape_cast %67 : vector<1x16x48xf32> to vector<16x48xf32>
    %c1_i32_31 = arith.constant 1 : i32
    %69 = tpu.dynamic_rotate %66 by %c1_i32_31 dim 1 : vector<16x128xf32>, i32 -> vector<16x128xf32>
    %c127_i32_32 = arith.constant 127 : i32
    %70 = tpu.dynamic_rotate %66 by %c127_i32_32 dim 1 : vector<16x128xf32>, i32 -> vector<16x128xf32>
    %71 = tpu.concatenate %69, %66, %70 in 0 : vector<16x128xf32>, vector<16x128xf32>, vector<16x128xf32> -> vector<48x128xf32>
    %cst_33 = arith.constant dense<0.000000e+00> : vector<16x128xf32>
    %72 = tpu.matmul %68, %71, %cst_33 {dimension_numbers = #tpu.dot_dimension_numbers<[1], [0], [0], [1], [0, 0, 1, 1], [], []>} : vector<16x48xf32>, vector<48x128xf32>, vector<16x128xf32> -> vector<16x128xf32>
    %73 = vector.extract_strided_slice %7 {offsets = [3, 0, 0], sizes = [1, 16, 1], strides = [1, 1, 1]} : vector<7x16x1xf32> to vector<1x16x1xf32>
    %74 = vector.shape_cast %73 : vector<1x16x1xf32> to vector<16x1xf32>
    %75 = vector.broadcast %74 : vector<16x1xf32> to vector<16x128xf32>
    %76 = arith.addf %72, %75 : vector<16x128xf32>
    %cst_34 = arith.constant 5.000000e-01 : f32
    %77 = vector.broadcast %cst_34 : f32 to vector<16x128xf32>
    %78 = arith.mulf %77, %76 : vector<16x128xf32>
    %cst_35 = arith.constant 0.707106769 : f32
    %79 = vector.broadcast %cst_35 : f32 to vector<16x128xf32>
    %80 = arith.mulf %76, %79 : vector<16x128xf32>
    %81 = math.erf %80 : vector<16x128xf32>
    %cst_36 = arith.constant 1.000000e+00 : f32
    %82 = vector.broadcast %cst_36 : f32 to vector<16x128xf32>
    %83 = arith.addf %82, %81 : vector<16x128xf32>
    %84 = arith.mulf %78, %83 : vector<16x128xf32>
    %85 = arith.mulf %10, %84 : vector<16x128xf32>
    %86 = vector.extract_strided_slice %5 {offsets = [3, 0, 0], sizes = [1, 16, 48], strides = [1, 1, 1]} : vector<6x16x48xf32> to vector<1x16x48xf32>
    %87 = vector.shape_cast %86 : vector<1x16x48xf32> to vector<16x48xf32>
    %c1_i32_37 = arith.constant 1 : i32
    %88 = tpu.dynamic_rotate %85 by %c1_i32_37 dim 1 : vector<16x128xf32>, i32 -> vector<16x128xf32>
    %c127_i32_38 = arith.constant 127 : i32
    %89 = tpu.dynamic_rotate %85 by %c127_i32_38 dim 1 : vector<16x128xf32>, i32 -> vector<16x128xf32>
    %90 = tpu.concatenate %88, %85, %89 in 0 : vector<16x128xf32>, vector<16x128xf32>, vector<16x128xf32> -> vector<48x128xf32>
    %cst_39 = arith.constant dense<0.000000e+00> : vector<16x128xf32>
    %91 = tpu.matmul %87, %90, %cst_39 {dimension_numbers = #tpu.dot_dimension_numbers<[1], [0], [0], [1], [0, 0, 1, 1], [], []>} : vector<16x48xf32>, vector<48x128xf32>, vector<16x128xf32> -> vector<16x128xf32>
    %92 = vector.extract_strided_slice %7 {offsets = [4, 0, 0], sizes = [1, 16, 1], strides = [1, 1, 1]} : vector<7x16x1xf32> to vector<1x16x1xf32>
    %93 = vector.shape_cast %92 : vector<1x16x1xf32> to vector<16x1xf32>
    %94 = vector.broadcast %93 : vector<16x1xf32> to vector<16x128xf32>
    %95 = arith.addf %91, %94 : vector<16x128xf32>
    %cst_40 = arith.constant 5.000000e-01 : f32
    %96 = vector.broadcast %cst_40 : f32 to vector<16x128xf32>
    %97 = arith.mulf %96, %95 : vector<16x128xf32>
    %cst_41 = arith.constant 0.707106769 : f32
    %98 = vector.broadcast %cst_41 : f32 to vector<16x128xf32>
    %99 = arith.mulf %95, %98 : vector<16x128xf32>
    %100 = math.erf %99 : vector<16x128xf32>
    %cst_42 = arith.constant 1.000000e+00 : f32
    %101 = vector.broadcast %cst_42 : f32 to vector<16x128xf32>
    %102 = arith.addf %101, %100 : vector<16x128xf32>
    %103 = arith.mulf %97, %102 : vector<16x128xf32>
    %104 = arith.addf %103, %66 : vector<16x128xf32>
    %105 = arith.mulf %10, %104 : vector<16x128xf32>
    %106 = vector.extract_strided_slice %5 {offsets = [4, 0, 0], sizes = [1, 16, 48], strides = [1, 1, 1]} : vector<6x16x48xf32> to vector<1x16x48xf32>
    %107 = vector.shape_cast %106 : vector<1x16x48xf32> to vector<16x48xf32>
    %c1_i32_43 = arith.constant 1 : i32
    %108 = tpu.dynamic_rotate %105 by %c1_i32_43 dim 1 : vector<16x128xf32>, i32 -> vector<16x128xf32>
    %c127_i32_44 = arith.constant 127 : i32
    %109 = tpu.dynamic_rotate %105 by %c127_i32_44 dim 1 : vector<16x128xf32>, i32 -> vector<16x128xf32>
    %110 = tpu.concatenate %108, %105, %109 in 0 : vector<16x128xf32>, vector<16x128xf32>, vector<16x128xf32> -> vector<48x128xf32>
    %cst_45 = arith.constant dense<0.000000e+00> : vector<16x128xf32>
    %111 = tpu.matmul %107, %110, %cst_45 {dimension_numbers = #tpu.dot_dimension_numbers<[1], [0], [0], [1], [0, 0, 1, 1], [], []>} : vector<16x48xf32>, vector<48x128xf32>, vector<16x128xf32> -> vector<16x128xf32>
    %112 = vector.extract_strided_slice %7 {offsets = [5, 0, 0], sizes = [1, 16, 1], strides = [1, 1, 1]} : vector<7x16x1xf32> to vector<1x16x1xf32>
    %113 = vector.shape_cast %112 : vector<1x16x1xf32> to vector<16x1xf32>
    %114 = vector.broadcast %113 : vector<16x1xf32> to vector<16x128xf32>
    %115 = arith.addf %111, %114 : vector<16x128xf32>
    %cst_46 = arith.constant 5.000000e-01 : f32
    %116 = vector.broadcast %cst_46 : f32 to vector<16x128xf32>
    %117 = arith.mulf %116, %115 : vector<16x128xf32>
    %cst_47 = arith.constant 0.707106769 : f32
    %118 = vector.broadcast %cst_47 : f32 to vector<16x128xf32>
    %119 = arith.mulf %115, %118 : vector<16x128xf32>
    %120 = math.erf %119 : vector<16x128xf32>
    %cst_48 = arith.constant 1.000000e+00 : f32
    %121 = vector.broadcast %cst_48 : f32 to vector<16x128xf32>
    %122 = arith.addf %121, %120 : vector<16x128xf32>
    %123 = arith.mulf %117, %122 : vector<16x128xf32>
    %124 = arith.mulf %10, %123 : vector<16x128xf32>
    %125 = vector.extract_strided_slice %5 {offsets = [5, 0, 0], sizes = [1, 16, 48], strides = [1, 1, 1]} : vector<6x16x48xf32> to vector<1x16x48xf32>
    %126 = vector.shape_cast %125 : vector<1x16x48xf32> to vector<16x48xf32>
    %c1_i32_49 = arith.constant 1 : i32
    %127 = tpu.dynamic_rotate %124 by %c1_i32_49 dim 1 : vector<16x128xf32>, i32 -> vector<16x128xf32>
    %c127_i32_50 = arith.constant 127 : i32
    %128 = tpu.dynamic_rotate %124 by %c127_i32_50 dim 1 : vector<16x128xf32>, i32 -> vector<16x128xf32>
    %129 = tpu.concatenate %127, %124, %128 in 0 : vector<16x128xf32>, vector<16x128xf32>, vector<16x128xf32> -> vector<48x128xf32>
    %cst_51 = arith.constant dense<0.000000e+00> : vector<16x128xf32>
    %130 = tpu.matmul %126, %129, %cst_51 {dimension_numbers = #tpu.dot_dimension_numbers<[1], [0], [0], [1], [0, 0, 1, 1], [], []>} : vector<16x48xf32>, vector<48x128xf32>, vector<16x128xf32> -> vector<16x128xf32>
    %131 = vector.extract_strided_slice %7 {offsets = [6, 0, 0], sizes = [1, 16, 1], strides = [1, 1, 1]} : vector<7x16x1xf32> to vector<1x16x1xf32>
    %132 = vector.shape_cast %131 : vector<1x16x1xf32> to vector<16x1xf32>
    %133 = vector.broadcast %132 : vector<16x1xf32> to vector<16x128xf32>
    %134 = arith.addf %130, %133 : vector<16x128xf32>
    %cst_52 = arith.constant 5.000000e-01 : f32
    %135 = vector.broadcast %cst_52 : f32 to vector<16x128xf32>
    %136 = arith.mulf %135, %134 : vector<16x128xf32>
    %cst_53 = arith.constant 0.707106769 : f32
    %137 = vector.broadcast %cst_53 : f32 to vector<16x128xf32>
    %138 = arith.mulf %134, %137 : vector<16x128xf32>
    %139 = math.erf %138 : vector<16x128xf32>
    %cst_54 = arith.constant 1.000000e+00 : f32
    %140 = vector.broadcast %cst_54 : f32 to vector<16x128xf32>
    %141 = arith.addf %140, %139 : vector<16x128xf32>
    %142 = arith.mulf %136, %141 : vector<16x128xf32>
    %143 = arith.addf %142, %105 : vector<16x128xf32>
    %c0_55 = arith.constant 0 : index
    %c0_56 = arith.constant 0 : index
    %c0_57 = arith.constant 0 : index
    %c0_58 = arith.constant 0 : index
    %144 = vector.load %arg7[%c0_55, %c0_56, %c0_57, %c0_58] : memref<1x1x16x128xf32, #tpu.memory_space<vmem>>, vector<1x1x16x128xf32>
    %145 = vector.shape_cast %144 : vector<1x1x16x128xf32> to vector<16x128xf32>
    %146 = vector.shape_cast %143 : vector<16x128xf32> to vector<1x1x16x128xf32>
    tpu.vector_store %arg7[%c0_55, %c0_56, %c0_57, %c0_58], %146 {strides = array<i32>} : memref<1x1x16x128xf32, #tpu.memory_space<vmem>>, vector<1x1x16x128xf32>,
    return
  }
  func.func @transform_0(%arg0: i32, %arg1: i32) -> (i32, i32) {
    %c0_i32 = arith.constant 0 : i32
    %c0_i32_0 = arith.constant 0 : i32
    %c0_i32_1 = arith.constant 0 : i32
    return %c0_i32, %c0_i32_0 : i32, i32
  }
  func.func @transform_1(%arg0: i32, %arg1: i32) -> (i32, i32, i32, i32) {
    %c0_i32 = arith.constant 0 : i32
    %c0_i32_0 = arith.constant 0 : i32
    %c0_i32_1 = arith.constant 0 : i32
    return %arg0, %arg1, %c0_i32, %c0_i32_0 : i32, i32, i32, i32
  }
  func.func @transform_2(%arg0: i32, %arg1: i32) -> (i32, i32, i32) {
    %c0_i32 = arith.constant 0 : i32
    %c0_i32_0 = arith.constant 0 : i32
    %c0_i32_1 = arith.constant 0 : i32
    return %arg0, %c0_i32, %c0_i32_0 : i32, i32, i32
  }
  func.func @transform_3(%arg0: i32, %arg1: i32) -> (i32, i32, i32, i32) {
    %c0_i32 = arith.constant 0 : i32
    %c0_i32_0 = arith.constant 0 : i32
    %c0_i32_1 = arith.constant 0 : i32
    %c0_i32_2 = arith.constant 0 : i32
    return %arg0, %c0_i32, %c0_i32_0, %c0_i32_1 : i32, i32, i32, i32
  }
  func.func @transform_4(%arg0: i32, %arg1: i32) -> (i32, i32, i32, i32) {
    %c0_i32 = arith.constant 0 : i32
    %c0_i32_0 = arith.constant 0 : i32
    %c0_i32_1 = arith.constant 0 : i32
    %c0_i32_2 = arith.constant 0 : i32
    return %arg0, %c0_i32, %c0_i32_0, %c0_i32_1 : i32, i32, i32, i32
  }
  func.func @transform_5(%arg0: i32, %arg1: i32) -> (i32, i32, i32, i32) {
    %c0_i32 = arith.constant 0 : i32
    %c0_i32_0 = arith.constant 0 : i32
    %c0_i32_1 = arith.constant 0 : i32
    return %arg0, %arg1, %c0_i32, %c0_i32_0 : i32, i32, i32, i32
  }
}

</mosaic_0001>

<bundles_post_ra>
// kernel: imu_processor.1
= control target key start
LH: loop header
LB: loop body
LE: loop exit
PB: predicated region body
PF: predicated region fallthrough
CT: control target
= control target key end

     0   :  { %s1662_s18 = smov 0   ;;  %s1664_s19 = smov 0   ;;  %s1926_s0 = inlined_call_operand.vmem [shape: f32[1,128], index: 0, kind: input, shape index: {}]   ;;  %s1927_s1 = inlined_call_operand.vmem [shape: f32[2,1,8,128], index: 1, kind: input, shape index: {}]   ;;  %s1928_s2 = inlined_call_operand.vmem [shape: f32[2,16,24], index: 2, kind: input, shape index: {}]   ;;  %s1929_s3 = inlined_call_operand.vmem [shape: f32[2,6,16,48], index: 3, kind: input, shape index: {}]   ;;  %s1930_s4 = inlined_call_operand.vmem [shape: f32[2,7,16,1], index: 4, kind: input, shape index: {}]   ;;  %s1931_s5 = inlined_call_operand.vmem [shape: f32[2,1,16,128], index: 5, kind: output, shape index: {}]  }
   0x1   :  { %s1666_s20 = smov 0  }
   0x2 LB: > { %s27_s21 = sadd.s32 1, %s1623_s19  ;;  %p1437_p0 = scmp.ge.s32.totalorder %s1627_s20, 1  ;;  %s1627_s20 = sphi %s1666_s20, %s15_s20   ;;  %s1623_s19 = sphi %s1664_s19, %s1933_s19   ;;  %s1619_s18 = sphi %s1662_s18, %s1932_s18  }
   0x3   : > { %p29_p1 = scmp.ge.s32.totalorder %s27_s21, 2  ;;  %p235_p2 = scmp.lt.s32.totalorder %s1627_s20, 3 }
   0x5   : > { %s1935_s21 = smov (%p29_p1, %s27_s21), 0  ;;  %p236_p3 = pnand %p1437_p0, %p235_p2 }
   0x6   : > { %p284_p4 = scmp.lt.s32.totalorder (!%p236_p3), %s1619_s18, 1  ;;  %s1629_s26 = smov (!%p236_p3), 127  }
   0x7   : > { %239 = sbr.rel (%p236_p3) target bundleno = 2225 (0x8b1), region = 40  ;;  %s1630_s27 = smov (!%p236_p3), 1  }
   0xc   : > { %s1937_s18 = smov (!%p284_p4, %s1619_s18), 1  ;;  %v1631_v2 = vmov 0   ;;  %vm362_vm0 = vcmask 195584   ;;  %vm500_vm9 = vcmask 392192  }
   0xd   : > { %s1438_s22 = sshll.u32 %s1937_s18, 3  ;;  %s1484_s28 = smul.u32 112, %s1937_s18  ;;  %1512 = vset.pattern.permute.xlu1 %v1631_v2  ;;  %1523 = vset.pattern.permute.xlu0 %v1631_v2 }
   0xe   : > { %s290_s25 = scalar_lea.vmem %s1927_s1, %s1438_s22  ;;  %1534 = vset.pattern.permute.xlu2 %v1631_v2  ;;  %s1475_s7 = sshll.u32 %s1937_s18, 4 }
   0xf   : > { %v315_v0 = vld [vmem:[%s290_s25] sm:$0xff]  ;;  %s1692_s6 = scalar_lea.vmem %s1930_s4, %s1484_s28  ;;  %s295_s10 = scalar_lea.vmem %s1928_s2, %s1475_s7 }
  0x10   : > { %350 = vrot.lane.b32.xlu0 %v315_v0, %s1629_s26  ;;  %v331_v1 = vld [vmem:[%s1692_s6 + $0x8] sm:$0xff]  ;;  %v330_v3 = vld [vmem:[%s1692_s6] sm:$0xff]  ;;  %v332_v4 = vld [vmem:[%s1692_s6 + $0x10] sm:$0xff]  ;;  %s1483_s13 = smul.u32 96, %s1937_s18  ;;  %s314_s25 = scalar_lea.vmem %s1931_s5, %s1475_s7 }
  0x11   : > { %359 = vperm.xlu1 %1512, %v331_v1   ;;  %v316_v6 = vld [vmem:[%s295_s10] sm:$0xff]  ;;  %v317_v8 = vld [vmem:[%s295_s10 + $0x8] sm:$0xff] }
  0x12   : > { %s1739_s16 = scalar_lea.vmem %s1929_s3, %s1483_s13 }
  0x18   : > { %348 = vrot.lane.b32.xlu0 %v315_v0, %s1630_s27 }
  0x19   : > { %354 = vperm.xlu1 %1512, %v330_v3  }
  0x21   : > { %492 = vperm.xlu1 %1512, %v332_v4  }
  0x82   : > { %v351_v5 = vpop.permute.xlu0 %350 }
  0x83   : > { %382 = vmatpush.msra.mxu0 %v351_v5  ;;  %v360_v9 = vpop.permute.xlu1 %359 }
  0x85   : > { %383 = vmatpush.msra.mxu0 %v315_v0 }
  0x8a   : > { %v349_v7 = vpop.permute.xlu0 %348 }
  0x8b   : > { %384 = vmatpush.msra.mxu0 %v349_v7  ;;  %v355_v10 = vpop.permute.xlu1 %354 }
  0x8c   : > { %1445 = vmatmul.msk.f32.vlgmr.msra.gmra.mxu0 %vm362_vm0, %v316_v6 }
  0x94   : > { %1446 = vmatmul.msk.f32.gmra.mxu0 %vm362_vm0, %v317_v8 }
 0x109   : > { %v386_v11 = vpop.f32.mrf.mxu0 }
 0x10a   : > { %v1703_v12 = vadd.f32 %v386_v11, %v355_v10 }
 0x10c   : > { %v394_v13 = vmul.f32 0.70710677, %v1703_v12 }
 0x10e   : > { %v396_v14 = vmul.f32 %v394_v13, %v394_v13 }
 0x110   : > { %v397_v15 = vmin.f32 %v396_v14, 16.0 }
 0x111   : > { %v389_v16 = vpop.f32.mrf.mxu0 }
 0x112   : > { %v398_v17 = vmul.f32 2.1237322e-06, %v397_v15  ;;  %v409_v18 = vmul.f32 3.8918573e-05, %v397_v15  ;;  %v1706_v19 = vadd.f32 %v389_v16, %v360_v9 }
 0x114   : > { %v399_v20 = vadd.f32 0.00028619796, %v398_v17  ;;  %v410_v21 = vadd.f32 0.001143296, %v409_v18  ;;  %v1709_v22 = vmul.f32 0.70710677, %v1706_v19 }
 0x116   : > { %v400_v23 = vmul.f32 %v399_v20, %v397_v15  ;;  %v411_v24 = vmul.f32 %v410_v21, %v397_v15  ;;  %v436_v25 = vmul.f32 %v1709_v22, %v1709_v22 }
 0x118   : > { %v412_v26 = vadd.f32 0.014752088, %v411_v24  ;;  %v437_v27 = vmin.f32 %v436_v25, 16.0  ;;  %v401_v28 = vadd.f32 0.0036580483, %v400_v23 }
 0x11a   : > { %v413_v29 = vmul.f32 %v412_v26, %v397_v15  ;;  %v438_v30 = vmul.f32 2.1237322e-06, %v437_v27  ;;  %v449_v31 = vmul.f32 3.8918573e-05, %v437_v27  ;;  %v402_v35 = vmul.f32 %v401_v28, %v397_v15  ;;  %v1718_v28 = vld [vmem:[%s1926_s0] ss:$0 sm:$0xff] }
 0x11b   : > { %v392_v26 = vmul.f32 0.5, %v1703_v12 }
 0x11c   : > { %v414_v32 = vadd.f32 0.112945676, %v413_v29  ;;  %v439_v33 = vadd.f32 0.00028619796, %v438_v30  ;;  %v450_v34 = vadd.f32 0.001143296, %v449_v31 }
 0x11d   : > { %v403_v41 = vadd.f32 0.05243302, %v402_v35  ;;  %v393_v30 = vmul.f32 0.5, %v1706_v19  ;;  %v334_v35 = vld [vmem:[%s1692_s6 + $0x20] sm:$0xff]  ;;  %v337_v19 = vld [vmem:[%s1692_s6 + $0x38] sm:$0xff] }
 0x11e   : > { %v415_v36 = vmul.f32 %v414_v32, %v397_v15  ;;  %v440_v37 = vmul.f32 %v439_v33, %v437_v27  ;;  %v451_v38 = vmul.f32 %v450_v34, %v437_v27  ;;  %v333_v34 = vld [vmem:[%s1692_s6 + $0x18] sm:$0xff] }
 0x11f   : > { %v404_v47 = vmul.f32 %v403_v41, %v397_v15  ;;  %497 = vperm.xlu0 %1523, %v333_v34  }
 0x120   : > { %v416_v39 = vadd.f32 0.4994258, %v415_v36  ;;  %v452_v40 = vadd.f32 0.014752088, %v451_v38  ;;  %v441_v43 = vadd.f32 0.0036580483, %v440_v37 }
 0x121   : > { %v405_v51 = vadd.f32 0.18741608, %v404_v47 }
 0x122   : > { %v417_v42 = vmul.f32 %v416_v39, %v397_v15  ;;  %v453_v44 = vmul.f32 %v452_v40, %v437_v27  ;;  %v442_v48 = vmul.f32 %v441_v43, %v437_v27  ;;  %v319_v43 = vld [vmem:[%s1739_s16 + $0x8] sm:$0xff] }
 0x123   : > { %v406_v57 = vmul.f32 %v405_v51, %v397_v15 }
 0x124   : > { %v418_v45 = vadd.f32 1.0, %v417_v42  ;;  %v454_v46 = vadd.f32 0.112945676, %v453_v44  ;;  %v443_v52 = vadd.f32 0.05243302, %v442_v48  ;;  %v318_v42 = vld [vmem:[%s1739_s16] sm:$0xff]  ;;  %v493_v44 = vpop.permute.xlu1 %492 }
 0x125   : > { %v407_v63 = vadd.f32 1.1283791, %v406_v57 }
 0x126   : > { %1576 = vrcp.f32 %v418_v45  ;;  %v455_v49 = vmul.f32 %v454_v46, %v437_v27  ;;  %v444_v58 = vmul.f32 %v443_v52, %v437_v27  ;;  %v430_v60 = vand.u32 2147483648, %v418_v45 }
 0x127   : > { %v428_v62 = vand.u32 2147483647, %v418_v45  ;;  %vm424_vm2 = vweird.f32 %v418_v45  ;;  %v408_v5 = vmul.f32 %v407_v63, %v394_v13  ;;  %630 = vperm.xlu0 %1523, %v334_v35  }
 0x128   : > { %v456_v50 = vadd.f32 0.4994258, %v455_v49  ;;  %v445_v0 = vadd.f32 0.18741608, %v444_v58  ;;  %v431_v2 = vor.u32 1.1754944e-38, %v430_v60 }
 0x129   : > { %vm429_vm4 = vcmp.eq.f32.partialorder %v428_v62, 8.507059e+37 }
 0x12a   : > { %v457_v53 = vmul.f32 %v456_v50, %v437_v27  ;;  %v446_v7 = vmul.f32 %v445_v0, %v437_v27 }
 0x12c   : > { %v1577_v54 = vpop.eup %1576  ;;  %v458_v56 = vadd.f32 1.0, %v457_v53  ;;  %v447_v14 = vadd.f32 1.1283791, %v446_v7 }
 0x12d   : > { %v420_v55 = vmul.f32 %v1577_v54, %v418_v45  ;;  %vm425_vm1 = vweird.f32 %v1577_v54 }
 0x12e   : > { %1578 = vrcp.f32 %v458_v56  ;;  %vm426_vm3 = vmor %vm424_vm2, %vm425_vm1  ;;  %v470_v11 = vand.u32 2147483648, %v458_v56  ;;  %v468_v16 = vand.u32 2147483647, %v458_v56  ;;  %vm464_vm6 = vweird.f32 %v458_v56 }
 0x12f   : > { %v421_v59 = vsub.f32 1.0, %v420_v55  ;;  %v448_v21 = vmul.f32 %v447_v14, %v1709_v22  ;;  %774 = vperm.xlu0 %1523, %v337_v19  }
 0x130   : > { %v471_v20 = vor.u32 1.1754944e-38, %v470_v11  ;;  %vm469_vm8 = vcmp.eq.f32.partialorder %v468_v16, 8.507059e+37 }
 0x131   : > { %v422_v61 = vmul.f32 %v1577_v54, %v421_v59 }
 0x133   : > { %v423_v1 = vadd.f32 %v1577_v54, %v422_v61 }
 0x134   : > { %v1579_v3 = vpop.eup %1578 }
 0x135   : > { %v427_v4 = vsel %vm426_vm3, %v1577_v54, %v423_v1  ;;  %v460_v8 = vmul.f32 %v1579_v3, %v458_v56  ;;  %vm465_vm5 = vweird.f32 %v1579_v3 }
 0x136   : > { %v432_v6 = vsel %vm429_vm4, %v431_v2, %v427_v4  ;;  %vm466_vm7 = vmor %vm464_vm6, %vm465_vm5 }
 0x137   : > { %v433_v9 = vmul.f32 %v432_v6, %v408_v5  ;;  %v461_v10 = vsub.f32 1.0, %v460_v8 }
 0x139   : > { %v462_v15 = vmul.f32 %v1579_v3, %v461_v10  ;;  %v1447_v17 = vclamps-f32 %v433_v9, 1.0 }
 0x13b   : > { %v463_v18 = vadd.f32 %v1579_v3, %v462_v15  ;;  %v476_v24 = vadd.f32 1.0, %v1447_v17 }
 0x13d   : > { %v467_v23 = vsel %vm466_vm7, %v1579_v3, %v463_v18  ;;  %v478_v29 = vmul.f32 %v476_v24, %v392_v26 }
 0x13e   : > { %v472_v13 = vsel %vm469_vm8, %v471_v20, %v467_v23 }
 0x13f   : > { %v473_v25 = vmul.f32 %v472_v13, %v448_v21  ;;  %v1722_v32 = vmul.f32 %v1718_v28, %v478_v29 }
 0x141   : > { %v1448_v27 = vclamps-f32 %v473_v25, 1.0 }
 0x143   : > { %v477_v22 = vadd.f32 1.0, %v1448_v27 }
 0x145   : > { %v479_v31 = vmul.f32 %v477_v22, %v393_v30 }
 0x147   : > { %v1725_v33 = vmul.f32 %v1718_v28, %v479_v31 }
 0x149   : > { %v1513_v12 = vpack.i.bf16 %v1722_v32, %v1725_v33 }
 0x14b   : > { %1514 = vrot.lane.b32.xlu2 %v1513_v12, %s1629_s26 }
 0x153   : > { %1519 = vrot.lane.b32.xlu2 %v1513_v12, %s1630_s27 }
 0x191   : > { %v498_v50 = vpop.permute.xlu0 %497 }
 0x1a5   : > { %v1515_v36 = vpop.permute.xlu2 %1514 }
 0x1a6   : > { %v1516_v37 = vunpack.i.l.bf16 %v1515_v36  ;;  %v1517_v38 = vunpack.i.h.bf16 %v1515_v36 }
 0x1a8   : > { %517 = vmatpush.msra.mxu1 %v1516_v37 }
 0x1aa   : > { %518 = vmatpush.msra.mxu1 %v1517_v38 }
 0x1ac   : > { %519 = vmatpush.msra.mxu1 %v1725_v33 }
 0x1ad   : > { %v1520_v39 = vpop.permute.xlu2 %1519 }
 0x1ae   : > { %520 = vmatpush.msra.mxu1 %v1722_v32  ;;  %v1521_v40 = vunpack.i.l.bf16 %v1520_v39  ;;  %v1522_v41 = vunpack.i.h.bf16 %v1520_v39 }
 0x1b0   : > { %521 = vmatpush.msra.mxu1 %v1521_v40 }
 0x1b2   : > { %522 = vmatpush.msra.mxu1 %v1522_v41 }
 0x1b3   : > { %1449 = vmatmul.msk.f32.vlgmr.msra.gmra.mxu1 %vm500_vm9, %v318_v42 }
 0x1bb   : > { %1450 = vmatmul.msk.f32.gmra.mxu1 %vm500_vm9, %v319_v43 }
 0x230   : > { %v524_v45 = vpop.f32.mrf.mxu1 }
 0x231   : > { %v1746_v46 = vadd.f32 %v524_v45, %v493_v44 }
 0x233   : > { %v1749_v47 = vmul.f32 0.70710677, %v1746_v46 }
 0x235   : > { %v534_v48 = vmul.f32 %v1749_v47, %v1749_v47 }
 0x237   : > { %v535_v49 = vmin.f32 %v534_v48, 16.0 }
 0x238   : > { %v527_v51 = vpop.f32.mrf.mxu1 }
 0x239   : > { %v536_v52 = vmul.f32 2.1237322e-06, %v535_v49  ;;  %v547_v53 = vmul.f32 3.8918573e-05, %v535_v49  ;;  %v1753_v54 = vadd.f32 %v527_v51, %v498_v50 }
 0x23b   : > { %v537_v55 = vadd.f32 0.00028619796, %v536_v52  ;;  %v548_v56 = vadd.f32 0.001143296, %v547_v53  ;;  %v1756_v57 = vmul.f32 0.70710677, %v1753_v54 }
 0x23d   : > { %v538_v58 = vmul.f32 %v537_v55, %v535_v49  ;;  %v549_v59 = vmul.f32 %v548_v56, %v535_v49  ;;  %v574_v60 = vmul.f32 %v1756_v57, %v1756_v57 }
 0x23f   : > { %v550_v61 = vadd.f32 0.014752088, %v549_v59  ;;  %v575_v62 = vmin.f32 %v574_v60, 16.0  ;;  %v539_v63 = vadd.f32 0.0036580483, %v538_v58 }
 0x241   : > { %v551_v0 = vmul.f32 %v550_v61, %v535_v49  ;;  %v576_v1 = vmul.f32 2.1237322e-06, %v575_v62  ;;  %v587_v2 = vmul.f32 3.8918573e-05, %v575_v62  ;;  %v540_v6 = vmul.f32 %v539_v63, %v535_v49 }
 0x243   : > { %v552_v3 = vadd.f32 0.112945676, %v551_v0  ;;  %v577_v4 = vadd.f32 0.00028619796, %v576_v1  ;;  %v588_v5 = vadd.f32 0.001143296, %v587_v2 }
 0x244   : > { %v541_v14 = vadd.f32 0.05243302, %v540_v6  ;;  %v530_v0 = vmul.f32 0.5, %v1746_v46 }
 0x245   : > { %v553_v7 = vmul.f32 %v552_v3, %v535_v49  ;;  %v578_v8 = vmul.f32 %v577_v4, %v575_v62  ;;  %v589_v9 = vmul.f32 %v588_v5, %v575_v62  ;;  %v531_v3 = vmul.f32 0.5, %v1753_v54 }
 0x246   : > { %v542_v21 = vmul.f32 %v541_v14, %v535_v49 }
 0x247   : > { %v554_v10 = vadd.f32 0.4994258, %v553_v7  ;;  %v590_v11 = vadd.f32 0.014752088, %v589_v9  ;;  %v579_v16 = vadd.f32 0.0036580483, %v578_v8 }
 0x248   : > { %v543_v25 = vadd.f32 0.18741608, %v542_v21 }
 0x249   : > { %v555_v15 = vmul.f32 %v554_v10, %v535_v49  ;;  %v591_v17 = vmul.f32 %v590_v11, %v575_v62  ;;  %v580_v23 = vmul.f32 %v579_v16, %v575_v62  ;;  %v335_v10 = vld [vmem:[%s1692_s6 + $0x28] sm:$0xff]  ;;  %v321_v16 = vld [vmem:[%s1739_s16 + $0x18] sm:$0xff] }
 0x24a   : > { %v544_v31 = vmul.f32 %v543_v25, %v535_v49 }
 0x24b   : > { %v556_v18 = vadd.f32 1.0, %v555_v15  ;;  %v592_v20 = vadd.f32 0.112945676, %v591_v17  ;;  %v581_v26 = vadd.f32 0.05243302, %v580_v23  ;;  %v320_v15 = vld [vmem:[%s1739_s16 + $0x10] sm:$0xff]  ;;  %v631_v17 = vpop.permute.xlu0 %630 }
 0x24c   : > { %v545_v37 = vadd.f32 1.1283791, %v544_v31 }
 0x24d   : > { %1580 = vrcp.f32 %v556_v18  ;;  %v593_v13 = vmul.f32 %v592_v20, %v575_v62  ;;  %v582_v12 = vmul.f32 %v581_v26, %v575_v62  ;;  %v568_v35 = vand.u32 2147483648, %v556_v18 }
 0x24e   : > { %v566_v36 = vand.u32 2147483647, %v556_v18  ;;  %vm562_vm11 = vweird.f32 %v556_v18  ;;  %v546_v43 = vmul.f32 %v545_v37, %v1749_v47 }
 0x24f   : > { %v594_v24 = vadd.f32 0.4994258, %v593_v13  ;;  %v583_v38 = vadd.f32 0.18741608, %v582_v12  ;;  %v569_v40 = vor.u32 1.1754944e-38, %v568_v35 }
 0x250   : > { %vm567_vm13 = vcmp.eq.f32.partialorder %v566_v36, 8.507059e+37 }
 0x251   : > { %v595_v27 = vmul.f32 %v594_v24, %v575_v62  ;;  %v584_v45 = vmul.f32 %v583_v38, %v575_v62 }
 0x253   : > { %v1581_v29 = vpop.eup %1580  ;;  %v596_v22 = vadd.f32 1.0, %v595_v27  ;;  %v585_v52 = vadd.f32 1.1283791, %v584_v45 }
 0x254   : > { %v558_v30 = vmul.f32 %v1581_v29, %v556_v18  ;;  %vm563_vm10 = vweird.f32 %v1581_v29 }
 0x255   : > { %1582 = vrcp.f32 %v596_v22  ;;  %vm564_vm12 = vmor %vm562_vm11, %vm563_vm10  ;;  %v608_v51 = vand.u32 2147483648, %v596_v22  ;;  %v606_v55 = vand.u32 2147483647, %v596_v22  ;;  %vm602_vm15 = vweird.f32 %v596_v22 }
 0x256   : > { %v559_v34 = vsub.f32 1.0, %v558_v30  ;;  %v586_v60 = vmul.f32 %v585_v52, %v1756_v57 }
 0x257   : > { %v609_v59 = vor.u32 1.1754944e-38, %v608_v51  ;;  %vm607_vm1 = vcmp.eq.f32.partialorder %v606_v55, 8.507059e+37 }
 0x258   : > { %v560_v19 = vmul.f32 %v1581_v29, %v559_v34 }
 0x25a   : > { %v561_v39 = vadd.f32 %v1581_v29, %v560_v19 }
 0x25b   : > { %v1583_v41 = vpop.eup %1582 }
 0x25c   : > { %v565_v42 = vsel %vm564_vm12, %v1581_v29, %v561_v39  ;;  %v598_v48 = vmul.f32 %v1583_v41, %v596_v22  ;;  %vm603_vm14 = vweird.f32 %v1583_v41 }
 0x25d   : > { %v570_v44 = vsel %vm567_vm13, %v569_v40, %v565_v42  ;;  %vm604_vm0 = vmor %vm602_vm15, %vm603_vm14 }
 0x25e   : > { %v571_v49 = vmul.f32 %v570_v44, %v546_v43  ;;  %v599_v50 = vsub.f32 1.0, %v598_v48 }
 0x260   : > { %v600_v53 = vmul.f32 %v1583_v41, %v599_v50  ;;  %v1451_v56 = vclamps-f32 %v571_v49, 1.0 }
 0x262   : > { %v601_v58 = vadd.f32 %v1583_v41, %v600_v53  ;;  %v614_v63 = vadd.f32 1.0, %v1451_v56 }
 0x264   : > { %v605_v61 = vsel %vm604_vm0, %v1583_v41, %v601_v58  ;;  %v616_v2 = vmul.f32 %v614_v63, %v530_v0 }
 0x265   : > { %v610_v47 = vsel %vm607_vm1, %v609_v59, %v605_v61 }
 0x266   : > { %v611_v62 = vmul.f32 %v610_v47, %v586_v60  ;;  %v618_v6 = vmul.f32 %v1718_v28, %v616_v2 }
 0x268   : > { %v1452_v1 = vclamps-f32 %v611_v62, 1.0 }
 0x26a   : > { %v615_v4 = vadd.f32 1.0, %v1452_v1 }
 0x26c   : > { %v617_v5 = vmul.f32 %v615_v4, %v531_v3 }
 0x26e   : > { %v619_v7 = vmul.f32 %v1718_v28, %v617_v5 }
 0x270   : > { %v1529_v8 = vpack.i.bf16 %v618_v6, %v619_v7 }
 0x272   : > { %1530 = vrot.lane.b32.xlu1 %v1529_v8, %s1630_s27  ;;  %1525 = vrot.lane.b32.xlu2 %v1529_v8, %s1629_s26 }
 0x27a   : > { %635 = vperm.xlu2 %1534, %v335_v10  }
 0x2cc   : > { %v1526_v57 = vpop.permute.xlu2 %1525 }
 0x2cd   : > { %v1527_v46 = vunpack.i.l.bf16 %v1526_v57  ;;  %v1528_v9 = vunpack.i.h.bf16 %v1526_v57 }
 0x2cf   : > { %654 = vmatpush.msra.mxu2 %v1527_v46 }
 0x2d1   : > { %655 = vmatpush.msra.mxu2 %v1528_v9 }
 0x2d3   : > { %656 = vmatpush.msra.mxu2 %v619_v7 }
 0x2d4   : > { %v636_v13 = vpop.permute.xlu2 %635 }
 0x2d5   : > { %657 = vmatpush.msra.mxu2 %v618_v6 }
 0x2e4   : > { %v1531_v54 = vpop.permute.xlu1 %1530 }
 0x2e5   : > { %v1532_v11 = vunpack.i.l.bf16 %v1531_v54  ;;  %v1533_v14 = vunpack.i.h.bf16 %v1531_v54 }
 0x2e7   : > { %658 = vmatpush.msra.mxu2 %v1532_v11 }
 0x2e9   : > { %659 = vmatpush.msra.mxu2 %v1533_v14 }
 0x2ea   : > { %1453 = vmatmul.msk.f32.vlgmr.msra.gmra.mxu2 %vm500_vm9, %v320_v15 }
 0x2f2   : > { %1454 = vmatmul.msk.f32.gmra.mxu2 %vm500_vm9, %v321_v16 }
 0x36d   : > { %v661_v18 = vpop.f32.mrf.mxu2 }
 0x36e   : > { %v1773_v20 = vadd.f32 %v661_v18, %v631_v17 }
 0x370   : > { %v669_v21 = vmul.f32 0.70710677, %v1773_v20 }
 0x372   : > { %v671_v23 = vmul.f32 %v669_v21, %v669_v21 }
 0x374   : > { %v672_v24 = vmin.f32 %v671_v23, 16.0 }
 0x375   : > { %v664_v25 = vpop.f32.mrf.mxu2 }
 0x376   : > { %v673_v26 = vmul.f32 2.1237322e-06, %v672_v24  ;;  %v684_v27 = vmul.f32 3.8918573e-05, %v672_v24  ;;  %v1776_v29 = vadd.f32 %v664_v25, %v636_v13 }
 0x378   : > { %v674_v30 = vadd.f32 0.00028619796, %v673_v26  ;;  %v685_v22 = vadd.f32 0.001143296, %v684_v27  ;;  %v1779_v31 = vmul.f32 0.70710677, %v1776_v29 }
 0x37a   : > { %v675_v12 = vmul.f32 %v674_v30, %v672_v24  ;;  %v686_v34 = vmul.f32 %v685_v22, %v672_v24  ;;  %v711_v35 = vmul.f32 %v1779_v31, %v1779_v31 }
 0x37c   : > { %v676_v19 = vadd.f32 0.0036580483, %v675_v12  ;;  %v687_v36 = vadd.f32 0.014752088, %v686_v34  ;;  %v712_v37 = vmin.f32 %v711_v35, 16.0 }
 0x37e   : > { %v688_v38 = vmul.f32 %v687_v36, %v672_v24  ;;  %v713_v39 = vmul.f32 2.1237322e-06, %v712_v37  ;;  %v724_v40 = vmul.f32 3.8918573e-05, %v712_v37  ;;  %v677_v41 = vmul.f32 %v676_v19, %v672_v24 }
 0x380   : > { %v689_v42 = vadd.f32 0.112945676, %v688_v38  ;;  %v714_v43 = vadd.f32 0.00028619796, %v713_v39  ;;  %v725_v44 = vadd.f32 0.001143296, %v724_v40 }
 0x381   : > { %v678_v50 = vadd.f32 0.05243302, %v677_v41  ;;  %v668_v41 = vmul.f32 0.5, %v1776_v29  ;;  %v336_v29 = vld [vmem:[%s1692_s6 + $0x30] sm:$0xff] }
 0x382   : > { %v690_v45 = vmul.f32 %v689_v42, %v672_v24  ;;  %v715_v48 = vmul.f32 %v714_v43, %v712_v37  ;;  %v726_v49 = vmul.f32 %v725_v44, %v712_v37 }
 0x383   : > { %v679_v58 = vmul.f32 %v678_v50, %v672_v24 }
 0x384   : > { %v691_v51 = vadd.f32 0.4994258, %v690_v45  ;;  %v716_v52 = vadd.f32 0.0036580483, %v715_v48  ;;  %v727_v53 = vadd.f32 0.014752088, %v726_v49 }
 0x385   : > { %v680_v63 = vadd.f32 0.18741608, %v679_v58 }
 0x386   : > { %v692_v55 = vmul.f32 %v691_v51, %v672_v24  ;;  %v728_v56 = vmul.f32 %v727_v53, %v712_v37  ;;  %v717_v60 = vmul.f32 %v716_v52, %v712_v37 }
 0x387   : > { %v681_v3 = vmul.f32 %v680_v63, %v672_v24 }
 0x388   : > { %v693_v59 = vadd.f32 1.0, %v692_v55  ;;  %v729_v61 = vadd.f32 0.112945676, %v728_v56  ;;  %v718_v62 = vadd.f32 0.05243302, %v717_v60  ;;  %v322_v55 = vld [vmem:[%s1739_s16 + $0x20] sm:$0xff] }
 0x389   : > { %v682_v8 = vadd.f32 1.1283791, %v681_v3  ;;  %v323_v56 = vld [vmem:[%s1739_s16 + $0x28] sm:$0xff] }
 0x38a   : > { %1584 = vrcp.f32 %v693_v59  ;;  %v730_v47 = vmul.f32 %v729_v61, %v712_v37  ;;  %v719_v5 = vmul.f32 %v718_v62, %v712_v37  ;;  %v705_v57 = vand.u32 2147483648, %v693_v59  ;;  %v775_v62 = vpop.permute.xlu0 %774 }
 0x38b   : > { %v703_v9 = vand.u32 2147483647, %v693_v59  ;;  %vm699_vm3 = vweird.f32 %v693_v59  ;;  %v683_v15 = vmul.f32 %v682_v8, %v669_v21 }
 0x38c   : > { %v731_v0 = vadd.f32 0.4994258, %v730_v47  ;;  %v720_v10 = vadd.f32 0.18741608, %v719_v5  ;;  %v706_v11 = vor.u32 1.1754944e-38, %v705_v57 }
 0x38d   : > { %vm704_vm5 = vcmp.eq.f32.partialorder %v703_v9, 8.507059e+37 }
 0x38e   : > { %v732_v1 = vmul.f32 %v731_v0, %v712_v37  ;;  %v721_v17 = vmul.f32 %v720_v10, %v712_v37  ;;  %v667_v37 = vmul.f32 0.5, %v1773_v20 }
 0x390   : > { %v1585_v2 = vpop.eup %1584  ;;  %v733_v6 = vadd.f32 1.0, %v732_v1  ;;  %v722_v25 = vadd.f32 1.1283791, %v721_v17 }
 0x391   : > { %v695_v4 = vmul.f32 %v1585_v2, %v693_v59  ;;  %vm700_vm2 = vweird.f32 %v1585_v2 }
 0x392   : > { %1586 = vrcp.f32 %v733_v6  ;;  %vm701_vm4 = vmor %vm699_vm3, %vm700_vm2  ;;  %v745_v26 = vand.u32 2147483648, %v733_v6  ;;  %v743_v22 = vand.u32 2147483647, %v733_v6  ;;  %vm739_vm7 = vweird.f32 %v733_v6 }
 0x393   : > { %v696_v7 = vsub.f32 1.0, %v695_v4  ;;  %v723_v21 = vmul.f32 %v722_v25, %v1779_v31 }
 0x394   : > { %v746_v34 = vor.u32 1.1754944e-38, %v745_v26  ;;  %vm744_vm10 = vcmp.eq.f32.partialorder %v743_v22, 8.507059e+37 }
 0x395   : > { %v697_v46 = vmul.f32 %v1585_v2, %v696_v7 }
 0x397   : > { %v698_v54 = vadd.f32 %v1585_v2, %v697_v46 }
 0x398   : > { %v1587_v14 = vpop.eup %1586 }
 0x399   : > { %v702_v16 = vsel %vm701_vm4, %v1585_v2, %v698_v54  ;;  %v735_v23 = vmul.f32 %v1587_v14, %v733_v6  ;;  %vm740_vm6 = vweird.f32 %v1587_v14 }
 0x39a   : > { %v707_v18 = vsel %vm704_vm5, %v706_v11, %v702_v16  ;;  %vm741_vm8 = vmor %vm739_vm7, %vm740_vm6 }
 0x39b   : > { %v708_v13 = vmul.f32 %v707_v18, %v683_v15  ;;  %v736_v24 = vsub.f32 1.0, %v735_v23 }
 0x39d   : > { %v1455_v27 = vclamps-f32 %v708_v13, 1.0  ;;  %v737_v30 = vmul.f32 %v1587_v14, %v736_v24 }
 0x39f   : > { %v738_v12 = vadd.f32 %v1587_v14, %v737_v30  ;;  %v751_v35 = vadd.f32 1.0, %v1455_v27 }
 0x3a1   : > { %v742_v19 = vsel %vm741_vm8, %v1587_v14, %v738_v12  ;;  %v753_v39 = vmul.f32 %v751_v35, %v667_v37 }
 0x3a2   : > { %v747_v36 = vsel %vm744_vm10, %v746_v34, %v742_v19 }
 0x3a3   : > { %v748_v38 = vmul.f32 %v747_v36, %v723_v21  ;;  %v755_v43 = vadd.f32 %v753_v39, %v1722_v32  ;;  %v339_v32 = vld [vmem:[%s1692_s6 + $0x48] sm:$0xff] }
 0x3a5   : > { %v1456_v40 = vclamps-f32 %v748_v38, 1.0  ;;  %v1789_v31 = vmul.f32 %v1718_v28, %v755_v43 }
 0x3a7   : > { %v752_v42 = vadd.f32 1.0, %v1456_v40 }
 0x3a9   : > { %v754_v44 = vmul.f32 %v752_v42, %v668_v41 }
 0x3ab   : > { %v756_v45 = vadd.f32 %v754_v44, %v1725_v33 }
 0x3ad   : > { %v1792_v48 = vmul.f32 %v1718_v28, %v756_v45 }
 0x3af   : > { %v1540_v20 = vpack.i.bf16 %v1789_v31, %v1792_v48 }
 0x3b1   : > { %1541 = vrot.lane.b32.xlu2 %v1540_v20, %s1630_s27  ;;  %1536 = vrot.lane.b32.xlu1 %v1540_v20, %s1629_s26 }
 0x3b9   : > { %769 = vperm.xlu1 %1512, %v336_v29  }
 0x3c1   : > { %911 = vperm.xlu1 %1512, %v339_v32  }
 0x40b   : > { %v1542_v51 = vpop.permute.xlu2 %1541 }
 0x40c   : > { %v1543_v52 = vunpack.i.l.bf16 %v1542_v51  ;;  %v1544_v53 = vunpack.i.h.bf16 %v1542_v51 }
 0x423   : > { %v1537_v33 = vpop.permute.xlu1 %1536 }
 0x424   : > { %v1538_v49 = vunpack.i.l.bf16 %v1537_v33  ;;  %v1539_v50 = vunpack.i.h.bf16 %v1537_v33 }
 0x426   : > { %793 = vmatpush.msra.mxu3 %v1538_v49 }
 0x428   : > { %794 = vmatpush.msra.mxu3 %v1539_v50 }
 0x42a   : > { %795 = vmatpush.msra.mxu3 %v1792_v48 }
 0x42b   : > { %v770_v58 = vpop.permute.xlu1 %769 }
 0x42c   : > { %796 = vmatpush.msra.mxu3 %v1789_v31 }
 0x42e   : > { %797 = vmatpush.msra.mxu3 %v1543_v52 }
 0x430   : > { %798 = vmatpush.msra.mxu3 %v1544_v53 }
 0x431   : > { %1457 = vmatmul.msk.f32.vlgmr.msra.gmra.mxu3 %vm500_vm9, %v322_v55 }
 0x439   : > { %1458 = vmatmul.msk.f32.gmra.mxu3 %vm500_vm9, %v323_v56 }
 0x4b4   : > { %v800_v59 = vpop.f32.mrf.mxu3 }
 0x4b5   : > { %v1806_v60 = vadd.f32 %v800_v59, %v770_v58 }
 0x4b7   : > { %v1809_v61 = vmul.f32 0.70710677, %v1806_v60 }
 0x4b9   : > { %v810_v47 = vmul.f32 %v1809_v61, %v1809_v61 }
 0x4bb   : > { %v811_v63 = vmin.f32 %v810_v47, 16.0 }
 0x4bc   : > { %v803_v0 = vpop.f32.mrf.mxu3 }
 0x4bd   : > { %v812_v1 = vmul.f32 2.1237322e-06, %v811_v63  ;;  %v823_v2 = vmul.f32 3.8918573e-05, %v811_v63  ;;  %v1813_v3 = vadd.f32 %v803_v0, %v775_v62 }
 0x4bf   : > { %v813_v4 = vadd.f32 0.00028619796, %v812_v1  ;;  %v824_v5 = vadd.f32 0.001143296, %v823_v2  ;;  %v1816_v6 = vmul.f32 0.70710677, %v1813_v3 }
 0x4c1   : > { %v814_v7 = vmul.f32 %v813_v4, %v811_v63  ;;  %v825_v8 = vmul.f32 %v824_v5, %v811_v63  ;;  %v850_v57 = vmul.f32 %v1816_v6, %v1816_v6 }
 0x4c3   : > { %v826_v46 = vadd.f32 0.014752088, %v825_v8  ;;  %v851_v9 = vmin.f32 %v850_v57, 16.0  ;;  %v815_v10 = vadd.f32 0.0036580483, %v814_v7 }
 0x4c5   : > { %v827_v54 = vmul.f32 %v826_v46, %v811_v63  ;;  %v852_v11 = vmul.f32 2.1237322e-06, %v851_v9  ;;  %v863_v14 = vmul.f32 3.8918573e-05, %v851_v9  ;;  %v816_v18 = vmul.f32 %v815_v10, %v811_v63 }
 0x4c7   : > { %v828_v15 = vadd.f32 0.112945676, %v827_v54  ;;  %v853_v16 = vadd.f32 0.00028619796, %v852_v11  ;;  %v864_v17 = vadd.f32 0.001143296, %v863_v14 }
 0x4c8   : > { %v817_v27 = vadd.f32 0.05243302, %v816_v18  ;;  %v806_v54 = vmul.f32 0.5, %v1806_v60 }
 0x4c9   : > { %v829_v23 = vmul.f32 %v828_v15, %v811_v63  ;;  %v854_v13 = vmul.f32 %v853_v16, %v851_v9  ;;  %v865_v24 = vmul.f32 %v864_v17, %v851_v9  ;;  %v807_v15 = vmul.f32 0.5, %v1813_v3 }
 0x4ca   : > { %v818_v21 = vmul.f32 %v817_v27, %v811_v63 }
 0x4cb   : > { %v830_v25 = vadd.f32 0.4994258, %v829_v23  ;;  %v866_v26 = vadd.f32 0.014752088, %v865_v24  ;;  %v855_v22 = vadd.f32 0.0036580483, %v854_v13 }
 0x4cc   : > { %v819_v38 = vadd.f32 0.18741608, %v818_v21  ;;  %v338_v13 = vld [vmem:[%s1692_s6 + $0x40] sm:$0xff]  ;;  %v341_v24 = vld [vmem:[%s1692_s6 + $0x58] sm:$0xff] }
 0x4cd   : > { %v831_v30 = vmul.f32 %v830_v25, %v811_v63  ;;  %v867_v12 = vmul.f32 %v866_v26, %v851_v9  ;;  %v856_v19 = vmul.f32 %v855_v22, %v851_v9  ;;  %v324_v22 = vld [vmem:[%s1739_s16 + $0x30] sm:$0xff] }
 0x4ce   : > { %v820_v44 = vmul.f32 %v819_v38, %v811_v63  ;;  %v912_v38 = vpop.permute.xlu1 %911 }
 0x4cf   : > { %v832_v34 = vadd.f32 1.0, %v831_v30  ;;  %v868_v35 = vadd.f32 0.112945676, %v867_v12  ;;  %v857_v39 = vadd.f32 0.05243302, %v856_v19  ;;  %v325_v12 = vld [vmem:[%s1739_s16 + $0x38] sm:$0xff] }
 0x4d0   : > { %v821_v49 = vadd.f32 1.1283791, %v820_v44 }
 0x4d1   : > { %1588 = vrcp.f32 %v832_v34  ;;  %v869_v36 = vmul.f32 %v868_v35, %v851_v9  ;;  %v858_v45 = vmul.f32 %v857_v39, %v851_v9  ;;  %v844_v29 = vand.u32 2147483648, %v832_v34 }
 0x4d2   : > { %v842_v33 = vand.u32 2147483647, %v832_v34  ;;  %vm838_vm12 = vweird.f32 %v832_v34  ;;  %v822_v56 = vmul.f32 %v821_v49, %v1809_v61 }
 0x4d3   : > { %v870_v37 = vadd.f32 0.4994258, %v869_v36  ;;  %v859_v50 = vadd.f32 0.18741608, %v858_v45  ;;  %v845_v52 = vor.u32 1.1754944e-38, %v844_v29 }
 0x4d4   : > { %vm843_vm14 = vcmp.eq.f32.partialorder %v842_v33, 8.507059e+37 }
 0x4d5   : > { %v871_v40 = vmul.f32 %v870_v37, %v851_v9  ;;  %v860_v59 = vmul.f32 %v859_v50, %v851_v9 }
 0x4d7   : > { %v1589_v41 = vpop.eup %1588  ;;  %v872_v43 = vadd.f32 1.0, %v871_v40  ;;  %v861_v1 = vadd.f32 1.1283791, %v860_v59 }
 0x4d8   : > { %v834_v42 = vmul.f32 %v1589_v41, %v832_v34  ;;  %vm839_vm11 = vweird.f32 %v1589_v41 }
 0x4d9   : > { %1590 = vrcp.f32 %v872_v43  ;;  %vm840_vm13 = vmor %vm838_vm12, %vm839_vm11  ;;  %v884_v0 = vand.u32 2147483648, %v872_v43  ;;  %v882_v4 = vand.u32 2147483647, %v872_v43  ;;  %vm878_vm0 = vweird.f32 %v872_v43 }
 0x4da   : > { %v835_v20 = vsub.f32 1.0, %v834_v42  ;;  %v862_v57 = vmul.f32 %v861_v1, %v1816_v6 }
 0x4db   : > { %v885_v8 = vor.u32 1.1754944e-38, %v884_v0  ;;  %vm883_vm2 = vcmp.eq.f32.partialorder %v882_v4, 8.507059e+37 }
 0x4dc   : > { %v836_v32 = vmul.f32 %v1589_v41, %v835_v20 }
 0x4de   : > { %v837_v51 = vadd.f32 %v1589_v41, %v836_v32 }
 0x4df   : > { %v1591_v53 = vpop.eup %1590 }
 0x4e0   : > { %v841_v55 = vsel %vm840_vm13, %v1589_v41, %v837_v51  ;;  %v874_v47 = vmul.f32 %v1591_v53, %v872_v43  ;;  %vm879_vm15 = vweird.f32 %v1591_v53 }
 0x4e1   : > { %v846_v58 = vsel %vm843_vm14, %v845_v52, %v841_v55  ;;  %vm880_vm1 = vmor %vm878_vm0, %vm879_vm15 }
 0x4e2   : > { %v847_v63 = vmul.f32 %v846_v58, %v822_v56  ;;  %v875_v62 = vsub.f32 1.0, %v874_v47 }
 0x4e4   : > { %v876_v2 = vmul.f32 %v1591_v53, %v875_v62  ;;  %v1459_v5 = vclamps-f32 %v847_v63, 1.0 }
 0x4e6   : > { %v877_v7 = vadd.f32 %v1591_v53, %v876_v2  ;;  %v890_v9 = vadd.f32 1.0, %v1459_v5 }
 0x4e8   : > { %v881_v46 = vsel %vm880_vm1, %v1591_v53, %v877_v7  ;;  %v892_v14 = vmul.f32 %v890_v9, %v806_v54 }
 0x4e9   : > { %v886_v61 = vsel %vm883_vm2, %v885_v8, %v881_v46 }
 0x4ea   : > { %v887_v10 = vmul.f32 %v886_v61, %v862_v57  ;;  %v894_v18 = vmul.f32 %v1718_v28, %v892_v14 }
 0x4ec   : > { %v1460_v11 = vclamps-f32 %v887_v10, 1.0 }
 0x4ee   : > { %v891_v16 = vadd.f32 1.0, %v1460_v11 }
 0x4f0   : > { %v893_v17 = vmul.f32 %v891_v16, %v807_v15 }
 0x4f2   : > { %v895_v23 = vmul.f32 %v1718_v28, %v893_v17 }
 0x4f4   : > { %v1550_v6 = vpack.i.bf16 %v894_v18, %v895_v23 }
 0x4f6   : > { %1551 = vrot.lane.b32.xlu0 %v1550_v6, %s1630_s27  ;;  %1546 = vrot.lane.b32.xlu2 %v1550_v6, %s1629_s26 }
 0x4fe   : > { %906 = vperm.xlu2 %1534, %v338_v13  }
 0x506   : > { %1050 = vperm.xlu2 %1534, %v341_v24  }
 0x550   : > { %v1547_v60 = vpop.permute.xlu2 %1546 }
 0x551   : > { %v1548_v25 = vunpack.i.l.bf16 %v1547_v60  ;;  %v1549_v3 = vunpack.i.h.bf16 %v1547_v60 }
 0x553   : > { %930 = vmatpush.msrb.mxu0 %v1548_v25 }
 0x555   : > { %931 = vmatpush.msrb.mxu0 %v1549_v3 }
 0x557   : > { %932 = vmatpush.msrb.mxu0 %v895_v23 }
 0x558   : > { %v907_v34 = vpop.permute.xlu2 %906 }
 0x559   : > { %933 = vmatpush.msrb.mxu0 %v894_v18 }
 0x568   : > { %v1552_v26 = vpop.permute.xlu0 %1551 }
 0x569   : > { %v1553_v27 = vunpack.i.l.bf16 %v1552_v26  ;;  %v1554_v30 = vunpack.i.h.bf16 %v1552_v26 }
 0x56b   : > { %934 = vmatpush.msrb.mxu0 %v1553_v27 }
 0x56d   : > { %935 = vmatpush.msrb.mxu0 %v1554_v30 }
 0x56e   : > { %1461 = vmatmul.msk.f32.vlgmr.msrb.gmra.mxu0 %vm500_vm9, %v324_v22 }
 0x576   : > { %1462 = vmatmul.msk.f32.gmra.mxu0 %vm500_vm9, %v325_v12 }
 0x5eb   : > { %v937_v35 = vpop.f32.mrf.mxu0 }
 0x5ec   : > { %v1834_v21 = vadd.f32 %v937_v35, %v907_v34 }
 0x5ee   : > { %v945_v19 = vmul.f32 0.70710677, %v1834_v21 }
 0x5f0   : > { %v947_v36 = vmul.f32 %v945_v19, %v945_v19 }
 0x5f2   : > { %v948_v37 = vmin.f32 %v947_v36, 16.0 }
 0x5f3   : > { %v940_v39 = vpop.f32.mrf.mxu0 }
 0x5f4   : > { %v949_v40 = vmul.f32 2.1237322e-06, %v948_v37  ;;  %v960_v41 = vmul.f32 3.8918573e-05, %v948_v37  ;;  %v1837_v42 = vadd.f32 %v940_v39, %v912_v38 }
 0x5f6   : > { %v950_v43 = vadd.f32 0.00028619796, %v949_v40  ;;  %v961_v44 = vadd.f32 0.001143296, %v960_v41  ;;  %v1840_v45 = vmul.f32 0.70710677, %v1837_v42 }
 0x5f8   : > { %v951_v20 = vmul.f32 %v950_v43, %v948_v37  ;;  %v962_v29 = vmul.f32 %v961_v44, %v948_v37  ;;  %v987_v32 = vmul.f32 %v1840_v45, %v1840_v45 }
 0x5fa   : > { %v952_v33 = vadd.f32 0.0036580483, %v951_v20  ;;  %v963_v49 = vadd.f32 0.014752088, %v962_v29  ;;  %v988_v50 = vmin.f32 %v987_v32, 16.0 }
 0x5fc   : > { %v964_v51 = vmul.f32 %v963_v49, %v948_v37  ;;  %v989_v52 = vmul.f32 2.1237322e-06, %v988_v50  ;;  %v1000_v53 = vmul.f32 3.8918573e-05, %v988_v50  ;;  %v953_v55 = vmul.f32 %v952_v33, %v948_v37 }
 0x5fe   : > { %v965_v56 = vadd.f32 0.112945676, %v964_v51  ;;  %v990_v58 = vadd.f32 0.00028619796, %v989_v52  ;;  %v1001_v59 = vadd.f32 0.001143296, %v1000_v53 }
 0x5ff   : > { %v954_v0 = vadd.f32 0.05243302, %v953_v55  ;;  %v944_v55 = vmul.f32 0.5, %v1837_v42  ;;  %v340_v42 = vld [vmem:[%s1692_s6 + $0x50] sm:$0xff] }
 0x600   : > { %v966_v47 = vmul.f32 %v965_v56, %v948_v37  ;;  %v991_v63 = vmul.f32 %v990_v58, %v988_v50  ;;  %v1002_v62 = vmul.f32 %v1001_v59, %v988_v50 }
 0x601   : > { %v955_v8 = vmul.f32 %v954_v0, %v948_v37 }
 0x602   : > { %v967_v1 = vadd.f32 0.4994258, %v966_v47  ;;  %v992_v2 = vadd.f32 0.0036580483, %v991_v63  ;;  %v1003_v4 = vadd.f32 0.014752088, %v1002_v62 }
 0x603   : > { %v956_v10 = vadd.f32 0.18741608, %v955_v8  ;;  %v342_v62 = vld [vmem:[%s1692_s6 + $0x60] sm:$0xff] }
 0x604   : > { %v968_v5 = vmul.f32 %v967_v1, %v948_v37  ;;  %v1004_v7 = vmul.f32 %v1003_v4, %v988_v50  ;;  %v993_v46 = vmul.f32 %v992_v2, %v988_v50  ;;  %v326_v4 = vld [vmem:[%s1739_s16 + $0x40] sm:$0xff] }
 0x605   : > { %v957_v16 = vmul.f32 %v956_v10, %v948_v37 }
 0x606   : > { %v969_v57 = vadd.f32 1.0, %v968_v5  ;;  %v1005_v61 = vadd.f32 0.112945676, %v1004_v7  ;;  %v994_v54 = vadd.f32 0.05243302, %v993_v46  ;;  %v327_v5 = vld [vmem:[%s1739_s16 + $0x48] sm:$0xff] }
 0x607   : > { %v958_v13 = vadd.f32 1.1283791, %v957_v16 }
 0x608   : > { %1592 = vrcp.f32 %v969_v57  ;;  %v1006_v9 = vmul.f32 %v1005_v61, %v988_v50  ;;  %v995_v18 = vmul.f32 %v994_v54, %v988_v50  ;;  %v981_v24 = vand.u32 2147483648, %v969_v57 }
 0x609   : > { %v979_v25 = vand.u32 2147483647, %v969_v57  ;;  %vm975_vm4 = vweird.f32 %v969_v57  ;;  %v959_v22 = vmul.f32 %v958_v13, %v945_v19 }
 0x60a   : > { %v1007_v11 = vadd.f32 0.4994258, %v1006_v9  ;;  %v996_v3 = vadd.f32 0.18741608, %v995_v18  ;;  %v982_v27 = vor.u32 1.1754944e-38, %v981_v24  ;;  %v1051_v9 = vpop.permute.xlu2 %1050 }
 0x60b   : > { %vm980_vm6 = vcmp.eq.f32.partialorder %v979_v25, 8.507059e+37 }
 0x60c   : > { %v1008_v14 = vmul.f32 %v1007_v11, %v988_v50  ;;  %v997_v34 = vmul.f32 %v996_v3, %v988_v50  ;;  %v943_v50 = vmul.f32 0.5, %v1834_v21 }
 0x60e   : > { %v1593_v15 = vpop.eup %1592  ;;  %v1009_v23 = vadd.f32 1.0, %v1008_v14  ;;  %v998_v39 = vadd.f32 1.1283791, %v997_v34 }
 0x60f   : > { %v971_v17 = vmul.f32 %v1593_v15, %v969_v57  ;;  %vm976_vm3 = vweird.f32 %v1593_v15 }
 0x610   : > { %1594 = vrcp.f32 %v1009_v23  ;;  %vm977_vm5 = vmor %vm975_vm4, %vm976_vm3  ;;  %v1021_v40 = vand.u32 2147483648, %v1009_v23  ;;  %v1019_v44 = vand.u32 2147483647, %v1009_v23  ;;  %vm1015_vm8 = vweird.f32 %v1009_v23 }
 0x611   : > { %v972_v6 = vsub.f32 1.0, %v971_v17  ;;  %v999_v19 = vmul.f32 %v998_v39, %v1840_v45 }
 0x612   : > { %v1022_v29 = vor.u32 1.1754944e-38, %v1021_v40  ;;  %vm1020_vm11 = vcmp.eq.f32.partialorder %v1019_v44, 8.507059e+37 }
 0x613   : > { %v973_v60 = vmul.f32 %v1593_v15, %v972_v6 }
 0x615   : > { %v974_v26 = vadd.f32 %v1593_v15, %v973_v60 }
 0x616   : > { %v1595_v30 = vpop.eup %1594 }
 0x617   : > { %v978_v12 = vsel %vm977_vm5, %v1593_v15, %v974_v26  ;;  %v1011_v36 = vmul.f32 %v1595_v30, %v1009_v23  ;;  %vm1016_vm7 = vweird.f32 %v1595_v30 }
 0x618   : > { %v983_v35 = vsel %vm980_vm6, %v982_v27, %v978_v12  ;;  %vm1017_vm10 = vmor %vm1015_vm8, %vm1016_vm7 }
 0x619   : > { %v984_v37 = vmul.f32 %v983_v35, %v959_v22  ;;  %v1012_v38 = vsub.f32 1.0, %v1011_v36 }
 0x61b   : > { %v1463_v41 = vclamps-f32 %v984_v37, 1.0  ;;  %v1013_v43 = vmul.f32 %v1595_v30, %v1012_v38 }
 0x61d   : > { %v1014_v20 = vadd.f32 %v1595_v30, %v1013_v43  ;;  %v1027_v32 = vadd.f32 1.0, %v1463_v41 }
 0x61f   : > { %v1018_v33 = vsel %vm1017_vm10, %v1595_v30, %v1014_v20  ;;  %v1029_v52 = vmul.f32 %v1027_v32, %v943_v50 }
 0x620   : > { %v1023_v49 = vsel %vm1020_vm11, %v1022_v29, %v1018_v33 }
 0x621   : > { %v1024_v51 = vmul.f32 %v1023_v49, %v999_v19  ;;  %v1031_v58 = vadd.f32 %v1029_v52, %v1789_v31 }
 0x623   : > { %v1464_v53 = vclamps-f32 %v1024_v51, 1.0  ;;  %v1850_v45 = vmul.f32 %v1718_v28, %v1031_v58 }
 0x625   : > { %v1028_v56 = vadd.f32 1.0, %v1464_v53 }
 0x627   : > { %v1030_v59 = vmul.f32 %v1028_v56, %v944_v55 }
 0x629   : > { %v1032_v47 = vadd.f32 %v1030_v59, %v1792_v48 }
 0x62b   : > { %v1853_v63 = vmul.f32 %v1718_v28, %v1032_v47 }
 0x62d   : > { %v1560_v21 = vpack.i.bf16 %v1850_v45, %v1853_v63 }
 0x62f   : > { %1561 = vrot.lane.b32.xlu1 %v1560_v21, %s1630_s27  ;;  %1556 = vrot.lane.b32.xlu0 %v1560_v21, %s1629_s26 }
 0x637   : > { %1045 = vperm.xlu0 %1523, %v340_v42  }
 0x63f   : > { %1182 = vperm.xlu0 %1523, %v342_v62  }
 0x6a1   : > { %v1557_v31 = vpop.permute.xlu0 %1556  ;;  %v1562_v28 = vpop.permute.xlu1 %1561 }
 0x6a2   : > { %v1558_v48 = vunpack.i.l.bf16 %v1557_v31  ;;  %v1559_v0 = vunpack.i.h.bf16 %v1557_v31  ;;  %v1563_v1 = vunpack.i.l.bf16 %v1562_v28  ;;  %v1564_v2 = vunpack.i.h.bf16 %v1562_v28 }
 0x6a4   : > { %1069 = vmatpush.msrb.mxu1 %v1558_v48  ;;  %1477 = vmatpush.msrb.mxu3 %v1558_v48 }
 0x6a6   : > { %1070 = vmatpush.msrb.mxu1 %v1559_v0  ;;  %1478 = vmatpush.msrb.mxu3 %v1559_v0 }
 0x6a8   : > { %1071 = vmatpush.msrb.mxu1 %v1853_v63  ;;  %1479 = vmatpush.msrb.mxu3 %v1853_v63 }
 0x6a9   : > { %v1046_v7 = vpop.permute.xlu0 %1045 }
 0x6aa   : > { %1072 = vmatpush.msrb.mxu1 %v1850_v45  ;;  %1480 = vmatpush.msrb.mxu3 %v1850_v45 }
 0x6ac   : > { %1073 = vmatpush.msrb.mxu1 %v1563_v1  ;;  %1481 = vmatpush.msrb.mxu3 %v1563_v1 }
 0x6ae   : > { %1074 = vmatpush.msrb.mxu1 %v1564_v2  ;;  %1482 = vmatpush.msrb.mxu3 %v1564_v2 }
 0x6af   : > { %1465 = vmatmul.msk.f32.vlgmr.msrb.gmra.mxu1 %vm500_vm9, %v326_v4  ;;  %1466 = vmatmul.msk.f32.vlgmr.msrb.gmra.mxu3 %vm500_vm9, %v327_v5 }
 0x72c   : > { %v1076_v8 = vpop.f32.mrf.mxu1 }
 0x72d   : > { %v1869_v57 = vadd.f32 %v1076_v8, %v1046_v7 }
 0x72f   : > { %v1872_v46 = vmul.f32 0.70710677, %v1869_v57 }
 0x731   : > { %v1086_v61 = vmul.f32 %v1872_v46, %v1872_v46 }
 0x732   : > { %v1079_v10 = vpop.f32.mrf.mxu3 }
 0x733   : > { %v1087_v54 = vmin.f32 %v1086_v61, 16.0  ;;  %v1876_v11 = vadd.f32 %v1079_v10, %v1051_v9 }
 0x735   : > { %v1088_v14 = vmul.f32 2.1237322e-06, %v1087_v54  ;;  %v1099_v15 = vmul.f32 3.8918573e-05, %v1087_v54  ;;  %v1879_v16 = vmul.f32 0.70710677, %v1876_v11 }
 0x737   : > { %v1089_v17 = vadd.f32 0.00028619796, %v1088_v14  ;;  %v1100_v18 = vadd.f32 0.001143296, %v1099_v15  ;;  %v1126_v23 = vmul.f32 %v1879_v16, %v1879_v16 }
 0x739   : > { %v1090_v6 = vmul.f32 %v1089_v17, %v1087_v54  ;;  %v1101_v13 = vmul.f32 %v1100_v18, %v1087_v54  ;;  %v1127_v24 = vmin.f32 %v1126_v23, 16.0 }
 0x73b   : > { %v1102_v60 = vadd.f32 0.014752088, %v1101_v13  ;;  %v1091_v25 = vadd.f32 0.0036580483, %v1090_v6  ;;  %v1128_v3 = vmul.f32 2.1237322e-06, %v1127_v24 }
 0x73c   : > { %v1139_v26 = vmul.f32 3.8918573e-05, %v1127_v24 }
 0x73d   : > { %v1103_v27 = vmul.f32 %v1102_v60, %v1087_v54  ;;  %v1129_v30 = vadd.f32 0.00028619796, %v1128_v3  ;;  %v1092_v34 = vmul.f32 %v1091_v25, %v1087_v54  ;;  %v1082_v25 = vmul.f32 0.5, %v1869_v57 }
 0x73e   : > { %v1140_v22 = vadd.f32 0.001143296, %v1139_v26 }
 0x73f   : > { %v1104_v12 = vadd.f32 0.112945676, %v1103_v27  ;;  %v1130_v35 = vmul.f32 %v1129_v30, %v1127_v24  ;;  %v1093_v41 = vadd.f32 0.05243302, %v1092_v34  ;;  %v1083_v27 = vmul.f32 0.5, %v1876_v11 }
 0x740   : > { %v1141_v36 = vmul.f32 %v1140_v22, %v1127_v24 }
 0x741   : > { %v1105_v37 = vmul.f32 %v1104_v12, %v1087_v54  ;;  %v1131_v40 = vadd.f32 0.0036580483, %v1130_v35  ;;  %v1094_v19 = vmul.f32 %v1093_v41, %v1087_v54  ;;  %v1604_v12 = vld [vmem:[%s1926_s0] ss:$0 sm:$0xff]  ;;  %v328_v41 = vld [vmem:[%s1739_s16 + $0x50] sm:$0xff] }
 0x742   : > { %v1142_v38 = vadd.f32 0.014752088, %v1141_v36  ;;  %v343_v36 = vld [vmem:[%s1692_s6 + $0x68] sm:$0xff] }
 0x743   : > { %v1106_v39 = vadd.f32 0.4994258, %v1105_v37  ;;  %v1132_v32 = vmul.f32 %v1131_v40, %v1127_v24  ;;  %v1095_v51 = vadd.f32 0.18741608, %v1094_v19 }
 0x744   : > { %v1143_v43 = vmul.f32 %v1142_v38, %v1127_v24 }
 0x745   : > { %v1107_v44 = vmul.f32 %v1106_v39, %v1087_v54  ;;  %v1133_v50 = vadd.f32 0.05243302, %v1132_v32  ;;  %v1096_v58 = vmul.f32 %v1095_v51, %v1087_v54 }
 0x746   : > { %v1144_v20 = vadd.f32 0.112945676, %v1143_v43  ;;  %v329_v43 = vld [vmem:[%s1739_s16 + $0x58] sm:$0xff] }
 0x747   : > { %v1108_v29 = vadd.f32 1.0, %v1107_v44  ;;  %v1134_v56 = vmul.f32 %v1133_v50, %v1127_v24  ;;  %v1097_v62 = vadd.f32 1.1283791, %v1096_v58  ;;  %v1183_v44 = vpop.permute.xlu0 %1182 }
 0x748   : > { %v1145_v33 = vmul.f32 %v1144_v20, %v1127_v24 }
 0x749   : > { %1596 = vrcp.f32 %v1108_v29  ;;  %v1120_v21 = vand.u32 2147483648, %v1108_v29  ;;  %v1135_v42 = vadd.f32 0.18741608, %v1134_v56  ;;  %v1118_v48 = vand.u32 2147483647, %v1108_v29 }
 0x74a   : > { %v1146_v49 = vadd.f32 0.4994258, %v1145_v33  ;;  %vm1114_vm13 = vweird.f32 %v1108_v29  ;;  %v1098_v5 = vmul.f32 %v1097_v62, %v1872_v46 }
 0x74b   : > { %v1121_v1 = vor.u32 1.1754944e-38, %v1120_v21  ;;  %v1136_v2 = vmul.f32 %v1135_v42, %v1127_v24  ;;  %vm1119_vm15 = vcmp.eq.f32.partialorder %v1118_v48, 8.507059e+37 }
 0x74c   : > { %v1147_v52 = vmul.f32 %v1146_v49, %v1127_v24 }
 0x74d   : > { %v1137_v54 = vadd.f32 1.1283791, %v1136_v2 }
 0x74e   : > { %v1148_v53 = vadd.f32 1.0, %v1147_v52 }
 0x74f   : > { %v1597_v55 = vpop.eup %1596  ;;  %v1138_v6 = vmul.f32 %v1137_v54, %v1879_v16 }
 0x750   : > { %v1110_v59 = vmul.f32 %v1597_v55, %v1108_v29  ;;  %1598 = vrcp.f32 %v1148_v53  ;;  %vm1115_vm12 = vweird.f32 %v1597_v55  ;;  %v1160_v10 = vand.u32 2147483648, %v1148_v53 }
 0x751   : > { %vm1116_vm14 = vmor %vm1114_vm13, %vm1115_vm12  ;;  %v1158_v15 = vand.u32 2147483647, %v1148_v53  ;;  %vm1154_vm1 = vweird.f32 %v1148_v53 }
 0x752   : > { %v1111_v47 = vsub.f32 1.0, %v1110_v59  ;;  %v1161_v23 = vor.u32 1.1754944e-38, %v1160_v10 }
 0x753   : > { %vm1159_vm3 = vcmp.eq.f32.partialorder %v1158_v15, 8.507059e+37 }
 0x754   : > { %v1112_v31 = vmul.f32 %v1597_v55, %v1111_v47 }
 0x756   : > { %v1599_v0 = vpop.eup %1598  ;;  %v1113_v28 = vadd.f32 %v1597_v55, %v1112_v31 }
 0x757   : > { %v1150_v4 = vmul.f32 %v1599_v0, %v1148_v53  ;;  %vm1155_vm0 = vweird.f32 %v1599_v0 }
 0x758   : > { %v1117_v7 = vsel %vm1116_vm14, %v1597_v55, %v1113_v28  ;;  %vm1156_vm2 = vmor %vm1154_vm1, %vm1155_vm0 }
 0x759   : > { %v1122_v8 = vsel %vm1119_vm15, %v1121_v1, %v1117_v7  ;;  %v1151_v61 = vsub.f32 1.0, %v1150_v4 }
 0x75a   : > { %v1123_v9 = vmul.f32 %v1122_v8, %v1098_v5 }
 0x75b   : > { %v1152_v14 = vmul.f32 %v1599_v0, %v1151_v61 }
 0x75c   : > { %v1467_v17 = vclamps-f32 %v1123_v9, 1.0 }
 0x75d   : > { %v1153_v18 = vadd.f32 %v1599_v0, %v1152_v14 }
 0x75e   : > { %v1166_v24 = vadd.f32 1.0, %v1467_v17 }
 0x75f   : > { %v1157_v13 = vsel %vm1156_vm2, %v1599_v0, %v1153_v18 }
 0x760   : > { %v1162_v46 = vsel %vm1159_vm3, %v1161_v23, %v1157_v13  ;;  %v1168_v26 = vmul.f32 %v1166_v24, %v1082_v25 }
 0x761   : > { %v1163_v60 = vmul.f32 %v1162_v46, %v1138_v6 }
 0x762   : > { %v1170_v34 = vmul.f32 %v1604_v12, %v1168_v26 }
 0x763   : > { %v1468_v3 = vclamps-f32 %v1163_v60, 1.0 }
 0x765   : > { %v1167_v30 = vadd.f32 1.0, %v1468_v3 }
 0x767   : > { %v1169_v22 = vmul.f32 %v1167_v30, %v1083_v27 }
 0x769   : > { %v1171_v16 = vmul.f32 %v1604_v12, %v1169_v22 }
 0x76b   : > { %v1570_v35 = vpack.i.bf16 %v1170_v34, %v1171_v16 }
 0x76d   : > { %1571 = vrot.lane.b32.xlu2 %v1570_v35, %s1630_s27  ;;  %1566 = vrot.lane.b32.xlu1 %v1570_v35, %s1629_s26 }
 0x775   : > { %1187 = vperm.xlu1 %1512, %v343_v36  }
 0x7c7   : > { %v1572_v38 = vpop.permute.xlu2 %1571 }
 0x7c8   : > { %v1573_v39 = vunpack.i.l.bf16 %v1572_v38  ;;  %v1574_v40 = vunpack.i.h.bf16 %v1572_v38 }
 0x7df   : > { %v1567_v57 = vpop.permute.xlu1 %1566 }
 0x7e0   : > { %v1568_v37 = vunpack.i.l.bf16 %v1567_v57  ;;  %v1569_v11 = vunpack.i.h.bf16 %v1567_v57 }
 0x7e2   : > { %1206 = vmatpush.msrb.mxu2 %v1568_v37 }
 0x7e4   : > { %1207 = vmatpush.msrb.mxu2 %v1569_v11 }
 0x7e6   : > { %1208 = vmatpush.msrb.mxu2 %v1171_v16 }
 0x7e7   : > { %v1188_v49 = vpop.permute.xlu1 %1187 }
 0x7e8   : > { %1209 = vmatpush.msrb.mxu2 %v1170_v34 }
 0x7ea   : > { %1210 = vmatpush.msrb.mxu2 %v1573_v39 }
 0x7ec   : > { %1211 = vmatpush.msrb.mxu2 %v1574_v40 }
 0x7ed   : > { %1469 = vmatmul.msk.f32.vlgmr.msrb.gmra.mxu2 %vm500_vm9, %v328_v41 }
 0x7f5   : > { %1470 = vmatmul.msk.f32.gmra.mxu2 %vm500_vm9, %v329_v43 }
 0x870   : > { %v1213_v20 = vpop.f32.mrf.mxu2 }
 0x871   : > { %v1897_v29 = vadd.f32 %v1213_v20, %v1183_v44 }
 0x873   : > { %v1221_v32 = vmul.f32 0.70710677, %v1897_v29 }
 0x875   : > { %v1223_v19 = vmul.f32 %v1221_v32, %v1221_v32 }
 0x877   : > { %v1224_v33 = vmin.f32 %v1223_v19, 16.0 }
 0x878   : > { %v1216_v50 = vpop.f32.mrf.mxu2 }
 0x879   : > { %v1225_v51 = vmul.f32 2.1237322e-06, %v1224_v33  ;;  %v1236_v52 = vmul.f32 3.8918573e-05, %v1224_v33  ;;  %v1900_v53 = vadd.f32 %v1216_v50, %v1188_v49 }
 0x87b   : > { %v1226_v55 = vadd.f32 0.00028619796, %v1225_v51  ;;  %v1237_v56 = vadd.f32 0.001143296, %v1236_v52  ;;  %v1903_v58 = vmul.f32 0.70710677, %v1900_v53 }
 0x87d   : > { %v1227_v59 = vmul.f32 %v1226_v55, %v1224_v33  ;;  %v1238_v47 = vmul.f32 %v1237_v56, %v1224_v33  ;;  %v1263_v21 = vmul.f32 %v1903_v58, %v1903_v58  ;;  %v1219_v56 = vmul.f32 0.5, %v1897_v29 }
 0x87f   : > { %v1239_v42 = vadd.f32 0.014752088, %v1238_v47  ;;  %v1228_v62 = vadd.f32 0.0036580483, %v1227_v59  ;;  %v1264_v31 = vmin.f32 %v1263_v21, 16.0 }
 0x881   : > { %v1240_v48 = vmul.f32 %v1239_v42, %v1224_v33  ;;  %v1265_v0 = vmul.f32 2.1237322e-06, %v1264_v31  ;;  %v1276_v28 = vmul.f32 3.8918573e-05, %v1264_v31  ;;  %v1229_v2 = vmul.f32 %v1228_v62, %v1224_v33 }
 0x883   : > { %v1241_v1 = vadd.f32 0.112945676, %v1240_v48  ;;  %v1266_v4 = vadd.f32 0.00028619796, %v1265_v0  ;;  %v1277_v5 = vadd.f32 0.001143296, %v1276_v28 }
 0x884   : > { %v1230_v10 = vadd.f32 0.05243302, %v1229_v2  ;;  %v1220_v28 = vmul.f32 0.5, %v1900_v53 }
 0x885   : > { %v1242_v7 = vmul.f32 %v1241_v1, %v1224_v33  ;;  %v1267_v8 = vmul.f32 %v1266_v4, %v1264_v31  ;;  %v1278_v61 = vmul.f32 %v1277_v5, %v1264_v31 }
 0x886   : > { %v1231_v23 = vmul.f32 %v1230_v10, %v1224_v33 }
 0x887   : > { %v1243_v9 = vadd.f32 0.4994258, %v1242_v7  ;;  %v1279_v54 = vadd.f32 0.014752088, %v1278_v61  ;;  %v1268_v15 = vadd.f32 0.0036580483, %v1267_v8 }
 0x888   : > { %v1232_v24 = vadd.f32 0.18741608, %v1231_v23 }
 0x889   : > { %v1244_v14 = vmul.f32 %v1243_v9, %v1224_v33  ;;  %v1280_v17 = vmul.f32 %v1279_v54, %v1264_v31  ;;  %v1269_v13 = vmul.f32 %v1268_v15, %v1264_v31 }
 0x88a   : > { %v1233_v27 = vmul.f32 %v1232_v24, %v1224_v33 }
 0x88b   : > { %v1245_v18 = vadd.f32 1.0, %v1244_v14  ;;  %v1281_v6 = vadd.f32 0.112945676, %v1280_v17  ;;  %v1270_v25 = vadd.f32 0.05243302, %v1269_v13 }
 0x88c   : > { %v1234_v35 = vadd.f32 1.1283791, %v1233_v27 }
 0x88d   : > { %1600 = vrcp.f32 %v1245_v18  ;;  %v1282_v46 = vmul.f32 %v1281_v6, %v1264_v31  ;;  %v1271_v12 = vmul.f32 %v1270_v25, %v1264_v31  ;;  %v1257_v16 = vand.u32 2147483648, %v1245_v18 }
 0x88e   : > { %v1255_v57 = vand.u32 2147483647, %v1245_v18  ;;  %vm1251_vm4 = vweird.f32 %v1245_v18  ;;  %v1235_v40 = vmul.f32 %v1234_v35, %v1221_v32 }
 0x88f   : > { %v1283_v60 = vadd.f32 0.4994258, %v1282_v46  ;;  %v1272_v37 = vadd.f32 0.18741608, %v1271_v12  ;;  %v1258_v38 = vor.u32 1.1754944e-38, %v1257_v16 }
 0x890   : > { %vm1256_vm6 = vcmp.eq.f32.partialorder %v1255_v57, 8.507059e+37 }
 0x891   : > { %v1284_v3 = vmul.f32 %v1283_v60, %v1264_v31  ;;  %v1273_v44 = vmul.f32 %v1272_v37, %v1264_v31 }
 0x893   : > { %v1601_v26 = vpop.eup %1600  ;;  %v1285_v22 = vadd.f32 1.0, %v1284_v3  ;;  %v1274_v51 = vadd.f32 1.1283791, %v1273_v44 }
 0x894   : > { %v1247_v30 = vmul.f32 %v1601_v26, %v1245_v18  ;;  %vm1252_vm9 = vweird.f32 %v1601_v26 }
 0x895   : > { %1602 = vrcp.f32 %v1285_v22  ;;  %vm1253_vm5 = vmor %vm1251_vm4, %vm1252_vm9  ;;  %v1297_v50 = vand.u32 2147483648, %v1285_v22  ;;  %v1295_v55 = vand.u32 2147483647, %v1285_v22  ;;  %vm1291_vm8 = vweird.f32 %v1285_v22 }
 0x896   : > { %v1248_v34 = vsub.f32 1.0, %v1247_v30  ;;  %v1275_v42 = vmul.f32 %v1274_v51, %v1903_v58 }
 0x897   : > { %v1298_v21 = vor.u32 1.1754944e-38, %v1297_v50  ;;  %vm1296_vm11 = vcmp.eq.f32.partialorder %v1295_v55, 8.507059e+37 }
 0x898   : > { %v1249_v36 = vmul.f32 %v1601_v26, %v1248_v34 }
 0x89a   : > { %v1250_v11 = vadd.f32 %v1601_v26, %v1249_v36 }
 0x89b   : > { %v1603_v39 = vpop.eup %1602 }
 0x89c   : > { %v1254_v41 = vsel %vm1253_vm5, %v1601_v26, %v1250_v11  ;;  %v1287_v20 = vmul.f32 %v1603_v39, %v1285_v22  ;;  %vm1292_vm7 = vweird.f32 %v1603_v39 }
 0x89d   : > { %v1259_v43 = vsel %vm1256_vm6, %v1258_v38, %v1254_v41  ;;  %vm1293_vm10 = vmor %vm1291_vm8, %vm1292_vm7 }
 0x89e   : > { %v1260_v19 = vmul.f32 %v1259_v43, %v1235_v40  ;;  %v1288_v33 = vsub.f32 1.0, %v1287_v20 }
 0x8a0   : > { %v1471_v49 = vclamps-f32 %v1260_v19, 1.0  ;;  %v1289_v52 = vmul.f32 %v1603_v39, %v1288_v33 }
 0x8a2   : > { %v1303_v59 = vadd.f32 1.0, %v1471_v49  ;;  %v1290_v47 = vadd.f32 %v1603_v39, %v1289_v52 }
 0x8a4   : > { %v1305_v32 = vmul.f32 %v1303_v59, %v1219_v56  ;;  %v1294_v62 = vsel %vm1293_vm10, %v1603_v39, %v1290_v47 }
 0x8a5   : > { %v1299_v48 = vsel %vm1296_vm11, %v1298_v21, %v1294_v62 }
 0x8a6   : > { %v1307_v31 = vadd.f32 %v1305_v32, %v1850_v45  ;;  %v1300_v0 = vmul.f32 %v1299_v48, %v1275_v42 }
 0x8a8   : > { %1309 = vst [vmem:[%s314_s25] sm:$0xff] %v1307_v31  ;;  %v1472_v29 = vclamps-f32 %v1300_v0, 1.0 }
 0x8aa   : > { %v1304_v1 = vadd.f32 1.0, %v1472_v29 }
 0x8ac   : > { %v1306_v2 = vmul.f32 %v1304_v1, %v1220_v28 }
 0x8ae   : > { %v1308_v4 = vadd.f32 %v1306_v2, %v1853_v63 }
 0x8b0   : > { %1310 = vst [vmem:[%s314_s25 + $0x8] sm:$0xff] %v1308_v4 }
 0x8b1 PF: > { %s15_s20 = sadd.s32 1, %s1627_s20   ;;  %s1932_s18 = smov %s1623_s19 }
 0x8b2   : > { %p12_p5 = scmp.ge.s32.totalorder %s15_s20, 4   ;;  %s1933_s19 = smov %s1935_s21 }
 0x8b4   :  { %14 = sbr.rel (!%p12_p5) target bundleno = 2 (0x2), region = 79 }

</bundles_post_ra>
